<compile_context>
chip_gen: v5e
topology: v5e:2x2
jax: 0.10.0
libtpu: 0.0.40
codegen_flags: <defaults>
</compile_context>

<pallas_src>
import functools

import jax
import jax.numpy as jnp
from jax import lax
from jax.experimental import pallas as pl
from jax.experimental.pallas import tpu as pltpu


def _round_up(x, m):
    return (x + m - 1) // m * m


_VMEM_LIMIT = 32 * 1024 * 1024   # leave headroom on v7x's 64 MiB VMEM
_TM_DEFAULT = 1024               # row tile for the fused conv1+conv2 matmul
_MIN_GRID_STEPS = 8              # give v7x's two TensorCores enough grid steps
_TH_CONV3 = 8                    # output rows per grid step in the conv3 kernel
_CONV3_NP = 8                    # conv3's 3 output channels padded to 8 lanes


# ---------------------------------------------------------------------------
# Kernels
# ---------------------------------------------------------------------------
def _fused_conv12_kernel(x_ref, w1_ref, b1_ref, w2_ref, b2_ref, o_ref):
    """relu( relu(x @ W1 + b1) @ W2 + b2 ) for one (tm, .) row tile of patches."""
    h = jnp.dot(x_ref[...], w1_ref[...], preferred_element_type=jnp.float32)
    h = jnp.maximum(h + b1_ref[...], 0.0).astype(jnp.bfloat16)
    y = jnp.dot(h, w2_ref[...], preferred_element_type=jnp.float32)
    o_ref[...] = jnp.maximum(y + b2_ref[...], 0.0).astype(o_ref.dtype)


def _conv3_kernel(h_ref, w_ref, b_ref, o_ref, *, kh, kw):
    """5x5 valid conv + bias + relu with in-kernel im2col.

    h_ref: (H1, W1, C)    full image, resident in VMEM (batch dim squeezed)
    w_ref: (kh*kw, C, NP) packed weights (bf16)
    b_ref: (1, NP)        bias (f32)
    o_ref: (TH, W3, NP)   output row tile (bf16)
    """
    H1 = h_ref.shape[0]
    TH, W3, NP = o_ref.shape
    i0 = pl.program_id(1) * TH
    bias = b_ref[...]                                     # (1, NP) f32

    def row_body(r, carry):
        acc = jnp.zeros((W3, NP), jnp.float32) + bias
        for di in range(kh):
            # Clamp keeps reads inside the VMEM block even if a ragged last
            # tile were ever to compute (masked-on-writeback) rows past H3.
            src = jnp.minimum(i0 + r + di, H1 - 1)
            for dj in range(kw):
                piece = h_ref[src, pl.ds(dj, W3), :]      # (W3, C) bf16
                acc = acc + jnp.dot(piece, w_ref[di * kw + dj],
                                    preferred_element_type=jnp.float32)
        o_ref[r] = jnp.maximum(acc, 0.0).astype(o_ref.dtype)
        return carry

    lax.fori_loop(0, TH, row_body, 0)


# ---------------------------------------------------------------------------
# Pallas wrappers
# ---------------------------------------------------------------------------
def _pick_tm(m):
    """Row tile: big enough to amortize per-step overhead, small enough that
    the grid has >= _MIN_GRID_STEPS steps (v7x megacore sharding).  Kept a
    multiple of 16 (bf16 sublane tile)."""
    if m <= 16:
        return m
    return min(_TM_DEFAULT, max(16, _round_up(-(-m // _MIN_GRID_STEPS), 16)))


def _pallas_fused_conv12(patches, w1p, b1p, w2p, b2p):
    """patches: (M, K1) bf16 -> (M, 64) bf16 : relu(relu(p@W1+b1)@W2+b2).

    No host-side M/K padding: K and N blocks are full-extent and the last M
    block is ragged (out-of-range rows are masked on writeback)."""
    M, K1 = patches.shape
    N1 = w1p.shape[1]
    N2 = w2p.shape[1]
    tm = _pick_tm(M)
    grid = (pl.cdiv(M, tm),)

    flops = 2 * M * K1 * N1 + 2 * M * N1 * N2
    bytes_accessed = (M * K1 + K1 * N1 + N1 * N2 + M * N2) * 2 + (N1 + N2) * 4

    return pl.pallas_call(
        _fused_conv12_kernel,
        out_shape=jax.ShapeDtypeStruct((M, N2), jnp.bfloat16),
        grid=grid,
        in_specs=[
            pl.BlockSpec((tm, K1), lambda i: (i, 0)),
            # Constant-index weight/bias blocks stay resident across the grid.
            # (pl.Buffered(1) would shave a little VMEM; skipped for robustness.)
            pl.BlockSpec((K1, N1), lambda i: (0, 0)),
            pl.BlockSpec((1, N1), lambda i: (0, 0)),
            pl.BlockSpec((N1, N2), lambda i: (0, 0)),
            pl.BlockSpec((1, N2), lambda i: (0, 0)),
        ],
        out_specs=pl.BlockSpec((tm, N2), lambda i: (i, 0)),
        compiler_params=pltpu.CompilerParams(
            dimension_semantics=("parallel",),
            vmem_limit_bytes=_VMEM_LIMIT),
        cost_estimate=pl.CostEstimate(
            flops=int(flops), transcendentals=0,
            bytes_accessed=int(bytes_accessed)),
    )(patches, w1p, b1p, w2p, b2p)


def _pallas_conv3(h_nhwc, w3p, b3p):
    """5x5 valid conv + bias + relu; im2col done inside the kernel.

    h_nhwc: (N, H1, W1, 64) bf16 -> (N, H3, W3, NP) bf16.  The whole image is
    resident in VMEM per batch element; grid steps only walk output row tiles,
    so the 25x-amplified patch matrix never touches HBM."""
    N, H1, W1, C = h_nhwc.shape
    kk, _, NP = w3p.shape
    kh = kw = int(round(kk ** 0.5))
    H3, W3 = H1 - kh + 1, W1 - kw + 1

    th = min(_TH_CONV3, H3)
    while H3 % th:            # exact divisor -> no ragged leading-dim blocks
        th -= 1
    grid = (N, H3 // th)

    flops = 2 * N * H3 * W3 * kk * C * NP
    bytes_accessed = (N * H1 * W1 * C + kk * C * NP + N * H3 * W3 * NP) * 2 + NP * 4

    return pl.pallas_call(
        functools.partial(_conv3_kernel, kh=kh, kw=kw),
        out_shape=jax.ShapeDtypeStruct((N, H3, W3, NP), jnp.bfloat16),
        grid=grid,
        in_specs=[
            pl.BlockSpec((None, H1, W1, C), lambda n, r: (n, 0, 0, 0)),
            pl.BlockSpec((kk, C, NP), lambda n, r: (0, 0, 0)),
            pl.BlockSpec((1, NP), lambda n, r: (0, 0)),
        ],
        out_specs=pl.BlockSpec((None, th, W3, NP), lambda n, r: (n, r, 0, 0)),
        compiler_params=pltpu.CompilerParams(
            dimension_semantics=("parallel", "parallel"),
            vmem_limit_bytes=_VMEM_LIMIT),
        cost_estimate=pl.CostEstimate(
            flops=int(flops), transcendentals=0,
            bytes_accessed=int(bytes_accessed)),
    )(h_nhwc, w3p, b3p)


# ---------------------------------------------------------------------------
# Glue: conv1 im2col (plain JAX, bf16) and weight pre-packing (done once)
# ---------------------------------------------------------------------------
def _im2col(x_nhwc, k):
    """kxk valid patches -> (N*Ho*Wo, k*k*C), kernel-position-major / C-minor."""
    N, H, W, C = x_nhwc.shape
    Ho, Wo = H - k + 1, W - k + 1
    cols = []
    for di in range(k):
        for dj in range(k):
            cols.append(x_nhwc[:, di:di + Ho, dj:dj + Wo, :])
    patches = jnp.stack(cols, axis=-2)                  # (N, Ho, Wo, k*k, C)
    return patches.reshape(N * Ho * Wo, k * k * C), (N, Ho, Wo)


def _pack_w_matrix(w_oihw):
    """(Cout, Cin, kh, kw) -> (kh*kw*Cin, Cout) bf16, matching im2col order."""
    Cout, Cin, kh, kw = w_oihw.shape
    return jnp.transpose(w_oihw, (2, 3, 1, 0)).reshape(kh * kw * Cin, Cout) \
        .astype(jnp.bfloat16)


def _pack_w_conv3(w_oihw, np_pad):
    """(Cout, Cin, kh, kw) -> (kh*kw, Cin, np_pad) bf16 (Cout zero-padded)."""
    Cout, Cin, kh, kw = w_oihw.shape
    wt = jnp.transpose(w_oihw, (2, 3, 1, 0)).reshape(kh * kw, Cin, Cout)
    return jnp.zeros((kh * kw, Cin, np_pad), jnp.bfloat16) \
        .at[..., :Cout].set(wt.astype(jnp.bfloat16))


def _pack_b(b, n_pad=None):
    n_pad = b.shape[0] if n_pad is None else n_pad
    return jnp.zeros((1, n_pad), jnp.float32).at[0, :b.shape[0]].set(b)


def pack_params(params):
    """Hoisted out of the forward path: transpose/pad/bf16-cast once."""
    return dict(
        w1=_pack_w_matrix(params["w1"]), b1=_pack_b(params["b1"]),
        w2=_pack_w_matrix(params["w2"]), b2=_pack_b(params["b2"]),
        w3=_pack_w_conv3(params["w3"], _CONV3_NP),
        b3=_pack_b(params["b3"], _CONV3_NP),
    )


# ---------------------------------------------------------------------------
# DMCNN forward
# ---------------------------------------------------------------------------
@jax.jit
def dmcnn_forward(x_nchw, packed):
    x = jnp.transpose(x_nchw, (0, 2, 3, 1)).astype(jnp.bfloat16)   # NCHW->NHWC

    # conv1 (9x9) + ReLU fused with conv2 (1x1) + ReLU.
    # TODO(synk): move the 9x9 im2col in-kernel too (halo'ed NHWC row strips).
    p1, (N, H1, W1) = _im2col(x, 9)
    h = _pallas_fused_conv12(p1, packed["w1"], packed["b1"],
                             packed["w2"], packed["b2"])
    h = h.reshape(N, H1, W1, h.shape[-1])                          # free reshape

    # conv3 (5x5) + ReLU with in-kernel im2col (h consumed directly as NHWC).
    y = _pallas_conv3(h, packed["w3"], packed["b3"])               # (N,H3,W3,8)
    y = y[..., :3].astype(jnp.float32)
    return jnp.transpose(y, (0, 3, 1, 2))                          # NHWC->NCHW


def init_params(key):
    """Deterministic init mimicking PyTorch default (uniform +-1/sqrt(fan_in))."""
    def conv_init(key, cout, cin, k):
        kw_key, kb_key = jax.random.split(key)
        fan_in = cin * k * k
        bound = 1.0 / (fan_in ** 0.5)
        w = jax.random.uniform(kw_key, (cout, cin, k, k), jnp.float32,
                               -bound, bound)
        b = jax.random.uniform(kb_key, (cout,), jnp.float32, -bound, bound)
        return w, b

    k1, k2, k3 = jax.random.split(key, 3)
    w1, b1 = conv_init(k1, 128, 3, 9)
    w2, b2 = conv_init(k2, 64, 128, 1)
    w3, b3 = conv_init(k3, 3, 64, 5)
    return dict(w1=w1, b1=b1, w2=w2, b2=b2, w3=w3, b3=b3)


# ---------------------------------------------------------------------------
# Reference (lax.conv with matching bf16 rounding) for correctness check
# ---------------------------------------------------------------------------
def _ref_forward(x_nchw, params):
    def conv(x, w, b):
        y = lax.conv_general_dilated(
            x.astype(jnp.bfloat16), w.astype(jnp.bfloat16),
            window_strides=(1, 1), padding="VALID",
            dimension_numbers=("NCHW", "OIHW", "NCHW"),
            preferred_element_type=jnp.float32)
        return jnp.maximum(y + b[None, :, None, None], 0.0)

    h1 = conv(x_nchw, params["w1"], params["b1"])
    h2 = conv(h1, params["w2"], params["b2"])
    h3 = conv(h2, params["w3"], params["b3"])
    return h3


if __name__ == "__main__":
    key = jax.random.PRNGKey(0)
    pkey, xkey = jax.random.split(key)
    params = init_params(pkey)
    packed = pack_params(params)

    # Small input: batch=2, 3 channels, 16x16 spatial (NCHW, like PyTorch).
    x = jax.random.normal(xkey, (2, 3, 16, 16), jnp.float32)

    out = jax.block_until_ready(dmcnn_forward(x, packed))
    ref = jax.block_until_ready(_ref_forward(x, params))

    assert out.shape == (2, 3, 4, 4), out.shape
    max_err = float(jnp.max(jnp.abs(out - ref)))
    assert jnp.allclose(out, ref, atol=2e-2, rtol=2e-2), max_err

    print("KERNEL_OK")
</pallas_src>

<mosaic_0001>
module attributes {stable_mosaic.version = 11 : i64} {
  func.func @_fused_conv12_kernel(%arg0: i32, %arg1: memref<16x243xbf16, #tpu.memory_space<vmem>>, %arg2: memref<243x128xbf16, #tpu.memory_space<vmem>>, %arg3: memref<1x128xf32, #tpu.memory_space<vmem>>, %arg4: memref<128x64xbf16, #tpu.memory_space<vmem>>, %arg5: memref<1x64xf32, #tpu.memory_space<vmem>>, %arg6: memref<16x64xbf16, #tpu.memory_space<vmem>>) attributes {dimension_semantics = [#tpu.dimension_semantics<parallel>], iteration_bounds = array<i64: 8>, scalar_prefetch = 0 : i64, scratch_operands = 0 : i64, tpu.core_type = #tpu.core_type<tc>, window_params = [{transform_indices = @transform_0, window_bounds = array<i64: 16, 243>}, {pipeline_mode = #tpu.pipeline_mode<synchronous>, transform_indices = @transform_1, window_bounds = array<i64: 243, 128>}, {pipeline_mode = #tpu.pipeline_mode<synchronous>, transform_indices = @transform_2, window_bounds = array<i64: 1, 128>}, {pipeline_mode = #tpu.pipeline_mode<synchronous>, transform_indices = @transform_3, window_bounds = array<i64: 128, 64>}, {pipeline_mode = #tpu.pipeline_mode<synchronous>, transform_indices = @transform_4, window_bounds = array<i64: 1, 64>}, {transform_indices = @transform_5, window_bounds = array<i64: 16, 64>}]} {
    %c0 = arith.constant 0 : index
    %c0_0 = arith.constant 0 : index
    %0 = vector.load %arg1[%c0, %c0_0] : memref<16x243xbf16, #tpu.memory_space<vmem>>, vector<16x243xbf16>
    %c0_1 = arith.constant 0 : index
    %c0_2 = arith.constant 0 : index
    %1 = vector.load %arg2[%c0_1, %c0_2] : memref<243x128xbf16, #tpu.memory_space<vmem>>, vector<243x128xbf16>
    %cst = arith.constant dense<0.000000e+00> : vector<16x128xf32>
    %2 = tpu.matmul %0, %1, %cst {dimension_numbers = #tpu.dot_dimension_numbers<[1], [0], [0], [1], [0, 0, 1, 1], [], []>} : vector<16x243xbf16>, vector<243x128xbf16>, vector<16x128xf32> -> vector<16x128xf32>
    %c0_3 = arith.constant 0 : index
    %c0_4 = arith.constant 0 : index
    %3 = vector.load %arg3[%c0_3, %c0_4] : memref<1x128xf32, #tpu.memory_space<vmem>>, vector<1x128xf32>
    %4 = vector.broadcast %3 : vector<1x128xf32> to vector<16x128xf32>
    %5 = arith.addf %2, %4 : vector<16x128xf32>
    %cst_5 = arith.constant 0.000000e+00 : f32
    %6 = vector.broadcast %cst_5 : f32 to vector<16x128xf32>
    %7 = arith.maximumf %5, %6 : vector<16x128xf32>
    %8 = arith.truncf %7 : vector<16x128xf32> to vector<16x128xbf16>
    %c0_6 = arith.constant 0 : index
    %c0_7 = arith.constant 0 : index
    %9 = vector.load %arg4[%c0_6, %c0_7] : memref<128x64xbf16, #tpu.memory_space<vmem>>, vector<128x64xbf16>
    %cst_8 = arith.constant dense<0.000000e+00> : vector<16x64xf32>
    %10 = tpu.matmul %8, %9, %cst_8 {dimension_numbers = #tpu.dot_dimension_numbers<[1], [0], [0], [1], [0, 0, 1, 1], [], []>} : vector<16x128xbf16>, vector<128x64xbf16>, vector<16x64xf32> -> vector<16x64xf32>
    %c0_9 = arith.constant 0 : index
    %c0_10 = arith.constant 0 : index
    %11 = vector.load %arg5[%c0_9, %c0_10] : memref<1x64xf32, #tpu.memory_space<vmem>>, vector<1x64xf32>
    %12 = vector.broadcast %11 : vector<1x64xf32> to vector<16x64xf32>
    %13 = arith.addf %10, %12 : vector<16x64xf32>
    %cst_11 = arith.constant 0.000000e+00 : f32
    %14 = vector.broadcast %cst_11 : f32 to vector<16x64xf32>
    %15 = arith.maximumf %13, %14 : vector<16x64xf32>
    %16 = arith.truncf %15 : vector<16x64xf32> to vector<16x64xbf16>
    %c0_12 = arith.constant 0 : index
    %c0_13 = arith.constant 0 : index
    %17 = vector.load %arg6[%c0_12, %c0_13] : memref<16x64xbf16, #tpu.memory_space<vmem>>, vector<16x64xbf16>
    tpu.vector_store %arg6[%c0_12, %c0_13], %16 {strides = array<i32>} : memref<16x64xbf16, #tpu.memory_space<vmem>>, vector<16x64xbf16>,
    return
  }
  func.func @transform_0(%arg0: i32) -> (i32, i32) {
    %c0_i32 = arith.constant 0 : i32
    %c0_i32_0 = arith.constant 0 : i32
    return %arg0, %c0_i32 : i32, i32
  }
  func.func @transform_1(%arg0: i32) -> (i32, i32) {
    %c0_i32 = arith.constant 0 : i32
    %c0_i32_0 = arith.constant 0 : i32
    %c0_i32_1 = arith.constant 0 : i32
    return %c0_i32, %c0_i32_0 : i32, i32
  }
  func.func @transform_2(%arg0: i32) -> (i32, i32) {
    %c0_i32 = arith.constant 0 : i32
    %c0_i32_0 = arith.constant 0 : i32
    %c0_i32_1 = arith.constant 0 : i32
    return %c0_i32, %c0_i32_0 : i32, i32
  }
  func.func @transform_3(%arg0: i32) -> (i32, i32) {
    %c0_i32 = arith.constant 0 : i32
    %c0_i32_0 = arith.constant 0 : i32
    %c0_i32_1 = arith.constant 0 : i32
    return %c0_i32, %c0_i32_0 : i32, i32
  }
  func.func @transform_4(%arg0: i32) -> (i32, i32) {
    %c0_i32 = arith.constant 0 : i32
    %c0_i32_0 = arith.constant 0 : i32
    %c0_i32_1 = arith.constant 0 : i32
    return %c0_i32, %c0_i32_0 : i32, i32
  }
  func.func @transform_5(%arg0: i32) -> (i32, i32) {
    %c0_i32 = arith.constant 0 : i32
    %c0_i32_0 = arith.constant 0 : i32
    return %arg0, %c0_i32 : i32, i32
  }
}

module attributes {stable_mosaic.version = 11 : i64} {
  func.func @_conv3_kernel(%arg0: i32, %arg1: i32, %arg2: memref<1x8x8x64xbf16, #tpu.memory_space<vmem>>, %arg3: memref<25x64x8xbf16, #tpu.memory_space<vmem>>, %arg4: memref<1x8xf32, #tpu.memory_space<vmem>>, %arg5: memref<1x4x4x8xbf16, #tpu.memory_space<vmem>>) attributes {dimension_semantics = [#tpu.dimension_semantics<parallel>, #tpu.dimension_semantics<parallel>], iteration_bounds = array<i64: 2, 1>, scalar_prefetch = 0 : i64, scratch_operands = 0 : i64, tpu.core_type = #tpu.core_type<tc>, window_params = [{transform_indices = @transform_0, window_bounds = array<i64: 1, 8, 8, 64>}, {pipeline_mode = #tpu.pipeline_mode<synchronous>, transform_indices = @transform_1, window_bounds = array<i64: 25, 64, 8>}, {pipeline_mode = #tpu.pipeline_mode<synchronous>, transform_indices = @transform_2, window_bounds = array<i64: 1, 8>}, {transform_indices = @transform_3, window_bounds = array<i64: 1, 4, 4, 8>}]} {
    %c4_i32 = arith.constant 4 : i32
    %0 = arith.muli %arg1, %c4_i32 : i32
    %c0 = arith.constant 0 : index
    %c0_0 = arith.constant 0 : index
    %1 = vector.load %arg4[%c0, %c0_0] : memref<1x8xf32, #tpu.memory_space<vmem>>, vector<1x8xf32>
    %c0_i32 = arith.constant 0 : i32
    %c4_i32_1 = arith.constant 4 : i32
    %2 = arith.addi %c0_i32, %c4_i32_1 : i32
    %c1_i32 = arith.constant 1 : i32
    scf.for %arg6 = %c0_i32 to %2 step %c1_i32  : i32 {
      %cst = arith.constant 0.000000e+00 : f32
      %3 = vector.broadcast %cst : f32 to vector<4x8xf32>
      %4 = vector.broadcast %1 : vector<1x8xf32> to vector<4x8xf32>
      %5 = arith.addf %3, %4 : vector<4x8xf32>
      %6 = arith.addi %0, %arg6 : i32
      %c0_i32_3 = arith.constant 0 : i32
      %7 = arith.addi %6, %c0_i32_3 : i32
      %c7_i32 = arith.constant 7 : i32
      %8 = arith.minsi %7, %c7_i32 : i32
      %c0_4 = arith.constant 0 : index
      %9 = arith.index_cast %8 : i32 to index
      %c0_5 = arith.constant 0 : index
      %c0_6 = arith.constant 0 : index
      %10 = vector.load %arg2[%c0_4, %9, %c0_5, %c0_6] : memref<1x8x8x64xbf16, #tpu.memory_space<vmem>>, vector<1x1x4x64xbf16>
      %11 = vector.shape_cast %10 : vector<1x1x4x64xbf16> to vector<4x64xbf16>
      %c0_7 = arith.constant 0 : index
      %c0_8 = arith.constant 0 : index
      %c0_9 = arith.constant 0 : index
      %12 = vector.load %arg3[%c0_7, %c0_8, %c0_9] : memref<25x64x8xbf16, #tpu.memory_space<vmem>>, vector<1x64x8xbf16>
      %13 = vector.shape_cast %12 : vector<1x64x8xbf16> to vector<64x8xbf16>
      %cst_10 = arith.constant dense<0.000000e+00> : vector<4x8xf32>
      %14 = tpu.matmul %11, %13, %cst_10 {dimension_numbers = #tpu.dot_dimension_numbers<[1], [0], [0], [1], [0, 0, 1, 1], [], []>} : vector<4x64xbf16>, vector<64x8xbf16>, vector<4x8xf32> -> vector<4x8xf32>
      %15 = arith.addf %5, %14 : vector<4x8xf32>
      %c0_11 = arith.constant 0 : index
      %16 = arith.index_cast %8 : i32 to index
      %c1 = arith.constant 1 : index
      %c0_12 = arith.constant 0 : index
      %17 = vector.load %arg2[%c0_11, %16, %c1, %c0_12] : memref<1x8x8x64xbf16, #tpu.memory_space<vmem>>, vector<1x1x4x64xbf16>
      %18 = vector.shape_cast %17 : vector<1x1x4x64xbf16> to vector<4x64xbf16>
      %c1_13 = arith.constant 1 : index
      %c0_14 = arith.constant 0 : index
      %c0_15 = arith.constant 0 : index
      %19 = vector.load %arg3[%c1_13, %c0_14, %c0_15] : memref<25x64x8xbf16, #tpu.memory_space<vmem>>, vector<1x64x8xbf16>
      %20 = vector.shape_cast %19 : vector<1x64x8xbf16> to vector<64x8xbf16>
      %cst_16 = arith.constant dense<0.000000e+00> : vector<4x8xf32>
      %21 = tpu.matmul %18, %20, %cst_16 {dimension_numbers = #tpu.dot_dimension_numbers<[1], [0], [0], [1], [0, 0, 1, 1], [], []>} : vector<4x64xbf16>, vector<64x8xbf16>, vector<4x8xf32> -> vector<4x8xf32>
      %22 = arith.addf %15, %21 : vector<4x8xf32>
      %c0_17 = arith.constant 0 : index
      %23 = arith.index_cast %8 : i32 to index
      %c2 = arith.constant 2 : index
      %c0_18 = arith.constant 0 : index
      %24 = vector.load %arg2[%c0_17, %23, %c2, %c0_18] : memref<1x8x8x64xbf16, #tpu.memory_space<vmem>>, vector<1x1x4x64xbf16>
      %25 = vector.shape_cast %24 : vector<1x1x4x64xbf16> to vector<4x64xbf16>
      %c2_19 = arith.constant 2 : index
      %c0_20 = arith.constant 0 : index
      %c0_21 = arith.constant 0 : index
      %26 = vector.load %arg3[%c2_19, %c0_20, %c0_21] : memref<25x64x8xbf16, #tpu.memory_space<vmem>>, vector<1x64x8xbf16>
      %27 = vector.shape_cast %26 : vector<1x64x8xbf16> to vector<64x8xbf16>
      %cst_22 = arith.constant dense<0.000000e+00> : vector<4x8xf32>
      %28 = tpu.matmul %25, %27, %cst_22 {dimension_numbers = #tpu.dot_dimension_numbers<[1], [0], [0], [1], [0, 0, 1, 1], [], []>} : vector<4x64xbf16>, vector<64x8xbf16>, vector<4x8xf32> -> vector<4x8xf32>
      %29 = arith.addf %22, %28 : vector<4x8xf32>
      %c0_23 = arith.constant 0 : index
      %30 = arith.index_cast %8 : i32 to index
      %c3 = arith.constant 3 : index
      %c0_24 = arith.constant 0 : index
      %31 = vector.load %arg2[%c0_23, %30, %c3, %c0_24] : memref<1x8x8x64xbf16, #tpu.memory_space<vmem>>, vector<1x1x4x64xbf16>
      %32 = vector.shape_cast %31 : vector<1x1x4x64xbf16> to vector<4x64xbf16>
      %c3_25 = arith.constant 3 : index
      %c0_26 = arith.constant 0 : index
      %c0_27 = arith.constant 0 : index
      %33 = vector.load %arg3[%c3_25, %c0_26, %c0_27] : memref<25x64x8xbf16, #tpu.memory_space<vmem>>, vector<1x64x8xbf16>
      %34 = vector.shape_cast %33 : vector<1x64x8xbf16> to vector<64x8xbf16>
      %cst_28 = arith.constant dense<0.000000e+00> : vector<4x8xf32>
      %35 = tpu.matmul %32, %34, %cst_28 {dimension_numbers = #tpu.dot_dimension_numbers<[1], [0], [0], [1], [0, 0, 1, 1], [], []>} : vector<4x64xbf16>, vector<64x8xbf16>, vector<4x8xf32> -> vector<4x8xf32>
      %36 = arith.addf %29, %35 : vector<4x8xf32>
      %c0_29 = arith.constant 0 : index
      %37 = arith.index_cast %8 : i32 to index
      %c4 = arith.constant 4 : index
      %c0_30 = arith.constant 0 : index
      %38 = vector.load %arg2[%c0_29, %37, %c4, %c0_30] : memref<1x8x8x64xbf16, #tpu.memory_space<vmem>>, vector<1x1x4x64xbf16>
      %39 = vector.shape_cast %38 : vector<1x1x4x64xbf16> to vector<4x64xbf16>
      %c4_31 = arith.constant 4 : index
      %c0_32 = arith.constant 0 : index
      %c0_33 = arith.constant 0 : index
      %40 = vector.load %arg3[%c4_31, %c0_32, %c0_33] : memref<25x64x8xbf16, #tpu.memory_space<vmem>>, vector<1x64x8xbf16>
      %41 = vector.shape_cast %40 : vector<1x64x8xbf16> to vector<64x8xbf16>
      %cst_34 = arith.constant dense<0.000000e+00> : vector<4x8xf32>
      %42 = tpu.matmul %39, %41, %cst_34 {dimension_numbers = #tpu.dot_dimension_numbers<[1], [0], [0], [1], [0, 0, 1, 1], [], []>} : vector<4x64xbf16>, vector<64x8xbf16>, vector<4x8xf32> -> vector<4x8xf32>
      %43 = arith.addf %36, %42 : vector<4x8xf32>
      %44 = arith.addi %0, %arg6 : i32
      %c1_i32_35 = arith.constant 1 : i32
      %45 = arith.addi %44, %c1_i32_35 : i32
      %c7_i32_36 = arith.constant 7 : i32
      %46 = arith.minsi %45, %c7_i32_36 : i32
      %c0_37 = arith.constant 0 : index
      %47 = arith.index_cast %46 : i32 to index
      %c0_38 = arith.constant 0 : index
      %c0_39 = arith.constant 0 : index
      %48 = vector.load %arg2[%c0_37, %47, %c0_38, %c0_39] : memref<1x8x8x64xbf16, #tpu.memory_space<vmem>>, vector<1x1x4x64xbf16>
      %49 = vector.shape_cast %48 : vector<1x1x4x64xbf16> to vector<4x64xbf16>
      %c5 = arith.constant 5 : index
      %c0_40 = arith.constant 0 : index
      %c0_41 = arith.constant 0 : index
      %50 = vector.load %arg3[%c5, %c0_40, %c0_41] : memref<25x64x8xbf16, #tpu.memory_space<vmem>>, vector<1x64x8xbf16>
      %51 = vector.shape_cast %50 : vector<1x64x8xbf16> to vector<64x8xbf16>
      %cst_42 = arith.constant dense<0.000000e+00> : vector<4x8xf32>
      %52 = tpu.matmul %49, %51, %cst_42 {dimension_numbers = #tpu.dot_dimension_numbers<[1], [0], [0], [1], [0, 0, 1, 1], [], []>} : vector<4x64xbf16>, vector<64x8xbf16>, vector<4x8xf32> -> vector<4x8xf32>
      %53 = arith.addf %43, %52 : vector<4x8xf32>
      %c0_43 = arith.constant 0 : index
      %54 = arith.index_cast %46 : i32 to index
      %c1_44 = arith.constant 1 : index
      %c0_45 = arith.constant 0 : index
      %55 = vector.load %arg2[%c0_43, %54, %c1_44, %c0_45] : memref<1x8x8x64xbf16, #tpu.memory_space<vmem>>, vector<1x1x4x64xbf16>
      %56 = vector.shape_cast %55 : vector<1x1x4x64xbf16> to vector<4x64xbf16>
      %c6 = arith.constant 6 : index
      %c0_46 = arith.constant 0 : index
      %c0_47 = arith.constant 0 : index
      %57 = vector.load %arg3[%c6, %c0_46, %c0_47] : memref<25x64x8xbf16, #tpu.memory_space<vmem>>, vector<1x64x8xbf16>
      %58 = vector.shape_cast %57 : vector<1x64x8xbf16> to vector<64x8xbf16>
      %cst_48 = arith.constant dense<0.000000e+00> : vector<4x8xf32>
      %59 = tpu.matmul %56, %58, %cst_48 {dimension_numbers = #tpu.dot_dimension_numbers<[1], [0], [0], [1], [0, 0, 1, 1], [], []>} : vector<4x64xbf16>, vector<64x8xbf16>, vector<4x8xf32> -> vector<4x8xf32>
      %60 = arith.addf %53, %59 : vector<4x8xf32>
      %c0_49 = arith.constant 0 : index
      %61 = arith.index_cast %46 : i32 to index
      %c2_50 = arith.constant 2 : index
      %c0_51 = arith.constant 0 : index
      %62 = vector.load %arg2[%c0_49, %61, %c2_50, %c0_51] : memref<1x8x8x64xbf16, #tpu.memory_space<vmem>>, vector<1x1x4x64xbf16>
      %63 = vector.shape_cast %62 : vector<1x1x4x64xbf16> to vector<4x64xbf16>
      %c7 = arith.constant 7 : index
      %c0_52 = arith.constant 0 : index
      %c0_53 = arith.constant 0 : index
      %64 = vector.load %arg3[%c7, %c0_52, %c0_53] : memref<25x64x8xbf16, #tpu.memory_space<vmem>>, vector<1x64x8xbf16>
      %65 = vector.shape_cast %64 : vector<1x64x8xbf16> to vector<64x8xbf16>
      %cst_54 = arith.constant dense<0.000000e+00> : vector<4x8xf32>
      %66 = tpu.matmul %63, %65, %cst_54 {dimension_numbers = #tpu.dot_dimension_numbers<[1], [0], [0], [1], [0, 0, 1, 1], [], []>} : vector<4x64xbf16>, vector<64x8xbf16>, vector<4x8xf32> -> vector<4x8xf32>
      %67 = arith.addf %60, %66 : vector<4x8xf32>
      %c0_55 = arith.constant 0 : index
      %68 = arith.index_cast %46 : i32 to index
      %c3_56 = arith.constant 3 : index
      %c0_57 = arith.constant 0 : index
      %69 = vector.load %arg2[%c0_55, %68, %c3_56, %c0_57] : memref<1x8x8x64xbf16, #tpu.memory_space<vmem>>, vector<1x1x4x64xbf16>
      %70 = vector.shape_cast %69 : vector<1x1x4x64xbf16> to vector<4x64xbf16>
      %c8 = arith.constant 8 : index
      %c0_58 = arith.constant 0 : index
      %c0_59 = arith.constant 0 : index
      %71 = vector.load %arg3[%c8, %c0_58, %c0_59] : memref<25x64x8xbf16, #tpu.memory_space<vmem>>, vector<1x64x8xbf16>
      %72 = vector.shape_cast %71 : vector<1x64x8xbf16> to vector<64x8xbf16>
      %cst_60 = arith.constant dense<0.000000e+00> : vector<4x8xf32>
      %73 = tpu.matmul %70, %72, %cst_60 {dimension_numbers = #tpu.dot_dimension_numbers<[1], [0], [0], [1], [0, 0, 1, 1], [], []>} : vector<4x64xbf16>, vector<64x8xbf16>, vector<4x8xf32> -> vector<4x8xf32>
      %74 = arith.addf %67, %73 : vector<4x8xf32>
      %c0_61 = arith.constant 0 : index
      %75 = arith.index_cast %46 : i32 to index
      %c4_62 = arith.constant 4 : index
      %c0_63 = arith.constant 0 : index
      %76 = vector.load %arg2[%c0_61, %75, %c4_62, %c0_63] : memref<1x8x8x64xbf16, #tpu.memory_space<vmem>>, vector<1x1x4x64xbf16>
      %77 = vector.shape_cast %76 : vector<1x1x4x64xbf16> to vector<4x64xbf16>
      %c9 = arith.constant 9 : index
      %c0_64 = arith.constant 0 : index
      %c0_65 = arith.constant 0 : index
      %78 = vector.load %arg3[%c9, %c0_64, %c0_65] : memref<25x64x8xbf16, #tpu.memory_space<vmem>>, vector<1x64x8xbf16>
      %79 = vector.shape_cast %78 : vector<1x64x8xbf16> to vector<64x8xbf16>
      %cst_66 = arith.constant dense<0.000000e+00> : vector<4x8xf32>
      %80 = tpu.matmul %77, %79, %cst_66 {dimension_numbers = #tpu.dot_dimension_numbers<[1], [0], [0], [1], [0, 0, 1, 1], [], []>} : vector<4x64xbf16>, vector<64x8xbf16>, vector<4x8xf32> -> vector<4x8xf32>
      %81 = arith.addf %74, %80 : vector<4x8xf32>
      %82 = arith.addi %0, %arg6 : i32
      %c2_i32 = arith.constant 2 : i32
      %83 = arith.addi %82, %c2_i32 : i32
      %c7_i32_67 = arith.constant 7 : i32
      %84 = arith.minsi %83, %c7_i32_67 : i32
      %c0_68 = arith.constant 0 : index
      %85 = arith.index_cast %84 : i32 to index
      %c0_69 = arith.constant 0 : index
      %c0_70 = arith.constant 0 : index
      %86 = vector.load %arg2[%c0_68, %85, %c0_69, %c0_70] : memref<1x8x8x64xbf16, #tpu.memory_space<vmem>>, vector<1x1x4x64xbf16>
      %87 = vector.shape_cast %86 : vector<1x1x4x64xbf16> to vector<4x64xbf16>
      %c10 = arith.constant 10 : index
      %c0_71 = arith.constant 0 : index
      %c0_72 = arith.constant 0 : index
      %88 = vector.load %arg3[%c10, %c0_71, %c0_72] : memref<25x64x8xbf16, #tpu.memory_space<vmem>>, vector<1x64x8xbf16>
      %89 = vector.shape_cast %88 : vector<1x64x8xbf16> to vector<64x8xbf16>
      %cst_73 = arith.constant dense<0.000000e+00> : vector<4x8xf32>
      %90 = tpu.matmul %87, %89, %cst_73 {dimension_numbers = #tpu.dot_dimension_numbers<[1], [0], [0], [1], [0, 0, 1, 1], [], []>} : vector<4x64xbf16>, vector<64x8xbf16>, vector<4x8xf32> -> vector<4x8xf32>
      %91 = arith.addf %81, %90 : vector<4x8xf32>
      %c0_74 = arith.constant 0 : index
      %92 = arith.index_cast %84 : i32 to index
      %c1_75 = arith.constant 1 : index
      %c0_76 = arith.constant 0 : index
      %93 = vector.load %arg2[%c0_74, %92, %c1_75, %c0_76] : memref<1x8x8x64xbf16, #tpu.memory_space<vmem>>, vector<1x1x4x64xbf16>
      %94 = vector.shape_cast %93 : vector<1x1x4x64xbf16> to vector<4x64xbf16>
      %c11 = arith.constant 11 : index
      %c0_77 = arith.constant 0 : index
      %c0_78 = arith.constant 0 : index
      %95 = vector.load %arg3[%c11, %c0_77, %c0_78] : memref<25x64x8xbf16, #tpu.memory_space<vmem>>, vector<1x64x8xbf16>
      %96 = vector.shape_cast %95 : vector<1x64x8xbf16> to vector<64x8xbf16>
      %cst_79 = arith.constant dense<0.000000e+00> : vector<4x8xf32>
      %97 = tpu.matmul %94, %96, %cst_79 {dimension_numbers = #tpu.dot_dimension_numbers<[1], [0], [0], [1], [0, 0, 1, 1], [], []>} : vector<4x64xbf16>, vector<64x8xbf16>, vector<4x8xf32> -> vector<4x8xf32>
      %98 = arith.addf %91, %97 : vector<4x8xf32>
      %c0_80 = arith.constant 0 : index
      %99 = arith.index_cast %84 : i32 to index
      %c2_81 = arith.constant 2 : index
      %c0_82 = arith.constant 0 : index
      %100 = vector.load %arg2[%c0_80, %99, %c2_81, %c0_82] : memref<1x8x8x64xbf16, #tpu.memory_space<vmem>>, vector<1x1x4x64xbf16>
      %101 = vector.shape_cast %100 : vector<1x1x4x64xbf16> to vector<4x64xbf16>
      %c12 = arith.constant 12 : index
      %c0_83 = arith.constant 0 : index
      %c0_84 = arith.constant 0 : index
      %102 = vector.load %arg3[%c12, %c0_83, %c0_84] : memref<25x64x8xbf16, #tpu.memory_space<vmem>>, vector<1x64x8xbf16>
      %103 = vector.shape_cast %102 : vector<1x64x8xbf16> to vector<64x8xbf16>
      %cst_85 = arith.constant dense<0.000000e+00> : vector<4x8xf32>
      %104 = tpu.matmul %101, %103, %cst_85 {dimension_numbers = #tpu.dot_dimension_numbers<[1], [0], [0], [1], [0, 0, 1, 1], [], []>} : vector<4x64xbf16>, vector<64x8xbf16>, vector<4x8xf32> -> vector<4x8xf32>
      %105 = arith.addf %98, %104 : vector<4x8xf32>
      %c0_86 = arith.constant 0 : index
      %106 = arith.index_cast %84 : i32 to index
      %c3_87 = arith.constant 3 : index
      %c0_88 = arith.constant 0 : index
      %107 = vector.load %arg2[%c0_86, %106, %c3_87, %c0_88] : memref<1x8x8x64xbf16, #tpu.memory_space<vmem>>, vector<1x1x4x64xbf16>
      %108 = vector.shape_cast %107 : vector<1x1x4x64xbf16> to vector<4x64xbf16>
      %c13 = arith.constant 13 : index
      %c0_89 = arith.constant 0 : index
      %c0_90 = arith.constant 0 : index
      %109 = vector.load %arg3[%c13, %c0_89, %c0_90] : memref<25x64x8xbf16, #tpu.memory_space<vmem>>, vector<1x64x8xbf16>
      %110 = vector.shape_cast %109 : vector<1x64x8xbf16> to vector<64x8xbf16>
      %cst_91 = arith.constant dense<0.000000e+00> : vector<4x8xf32>
      %111 = tpu.matmul %108, %110, %cst_91 {dimension_numbers = #tpu.dot_dimension_numbers<[1], [0], [0], [1], [0, 0, 1, 1], [], []>} : vector<4x64xbf16>, vector<64x8xbf16>, vector<4x8xf32> -> vector<4x8xf32>
      %112 = arith.addf %105, %111 : vector<4x8xf32>
      %c0_92 = arith.constant 0 : index
      %113 = arith.index_cast %84 : i32 to index
      %c4_93 = arith.constant 4 : index
      %c0_94 = arith.constant 0 : index
      %114 = vector.load %arg2[%c0_92, %113, %c4_93, %c0_94] : memref<1x8x8x64xbf16, #tpu.memory_space<vmem>>, vector<1x1x4x64xbf16>
      %115 = vector.shape_cast %114 : vector<1x1x4x64xbf16> to vector<4x64xbf16>
      %c14 = arith.constant 14 : index
      %c0_95 = arith.constant 0 : index
      %c0_96 = arith.constant 0 : index
      %116 = vector.load %arg3[%c14, %c0_95, %c0_96] : memref<25x64x8xbf16, #tpu.memory_space<vmem>>, vector<1x64x8xbf16>
      %117 = vector.shape_cast %116 : vector<1x64x8xbf16> to vector<64x8xbf16>
      %cst_97 = arith.constant dense<0.000000e+00> : vector<4x8xf32>
      %118 = tpu.matmul %115, %117, %cst_97 {dimension_numbers = #tpu.dot_dimension_numbers<[1], [0], [0], [1], [0, 0, 1, 1], [], []>} : vector<4x64xbf16>, vector<64x8xbf16>, vector<4x8xf32> -> vector<4x8xf32>
      %119 = arith.addf %112, %118 : vector<4x8xf32>
      %120 = arith.addi %0, %arg6 : i32
      %c3_i32 = arith.constant 3 : i32
      %121 = arith.addi %120, %c3_i32 : i32
      %c7_i32_98 = arith.constant 7 : i32
      %122 = arith.minsi %121, %c7_i32_98 : i32
      %c0_99 = arith.constant 0 : index
      %123 = arith.index_cast %122 : i32 to index
      %c0_100 = arith.constant 0 : index
      %c0_101 = arith.constant 0 : index
      %124 = vector.load %arg2[%c0_99, %123, %c0_100, %c0_101] : memref<1x8x8x64xbf16, #tpu.memory_space<vmem>>, vector<1x1x4x64xbf16>
      %125 = vector.shape_cast %124 : vector<1x1x4x64xbf16> to vector<4x64xbf16>
      %c15 = arith.constant 15 : index
      %c0_102 = arith.constant 0 : index
      %c0_103 = arith.constant 0 : index
      %126 = vector.load %arg3[%c15, %c0_102, %c0_103] : memref<25x64x8xbf16, #tpu.memory_space<vmem>>, vector<1x64x8xbf16>
      %127 = vector.shape_cast %126 : vector<1x64x8xbf16> to vector<64x8xbf16>
      %cst_104 = arith.constant dense<0.000000e+00> : vector<4x8xf32>
      %128 = tpu.matmul %125, %127, %cst_104 {dimension_numbers = #tpu.dot_dimension_numbers<[1], [0], [0], [1], [0, 0, 1, 1], [], []>} : vector<4x64xbf16>, vector<64x8xbf16>, vector<4x8xf32> -> vector<4x8xf32>
      %129 = arith.addf %119, %128 : vector<4x8xf32>
      %c0_105 = arith.constant 0 : index
      %130 = arith.index_cast %122 : i32 to index
      %c1_106 = arith.constant 1 : index
      %c0_107 = arith.constant 0 : index
      %131 = vector.load %arg2[%c0_105, %130, %c1_106, %c0_107] : memref<1x8x8x64xbf16, #tpu.memory_space<vmem>>, vector<1x1x4x64xbf16>
      %132 = vector.shape_cast %131 : vector<1x1x4x64xbf16> to vector<4x64xbf16>
      %c16 = arith.constant 16 : index
      %c0_108 = arith.constant 0 : index
      %c0_109 = arith.constant 0 : index
      %133 = vector.load %arg3[%c16, %c0_108, %c0_109] : memref<25x64x8xbf16, #tpu.memory_space<vmem>>, vector<1x64x8xbf16>
      %134 = vector.shape_cast %133 : vector<1x64x8xbf16> to vector<64x8xbf16>
      %cst_110 = arith.constant dense<0.000000e+00> : vector<4x8xf32>
      %135 = tpu.matmul %132, %134, %cst_110 {dimension_numbers = #tpu.dot_dimension_numbers<[1], [0], [0], [1], [0, 0, 1, 1], [], []>} : vector<4x64xbf16>, vector<64x8xbf16>, vector<4x8xf32> -> vector<4x8xf32>
      %136 = arith.addf %129, %135 : vector<4x8xf32>
      %c0_111 = arith.constant 0 : index
      %137 = arith.index_cast %122 : i32 to index
      %c2_112 = arith.constant 2 : index
      %c0_113 = arith.constant 0 : index
      %138 = vector.load %arg2[%c0_111, %137, %c2_112, %c0_113] : memref<1x8x8x64xbf16, #tpu.memory_space<vmem>>, vector<1x1x4x64xbf16>
      %139 = vector.shape_cast %138 : vector<1x1x4x64xbf16> to vector<4x64xbf16>
      %c17 = arith.constant 17 : index
      %c0_114 = arith.constant 0 : index
      %c0_115 = arith.constant 0 : index
      %140 = vector.load %arg3[%c17, %c0_114, %c0_115] : memref<25x64x8xbf16, #tpu.memory_space<vmem>>, vector<1x64x8xbf16>
      %141 = vector.shape_cast %140 : vector<1x64x8xbf16> to vector<64x8xbf16>
      %cst_116 = arith.constant dense<0.000000e+00> : vector<4x8xf32>
      %142 = tpu.matmul %139, %141, %cst_116 {dimension_numbers = #tpu.dot_dimension_numbers<[1], [0], [0], [1], [0, 0, 1, 1], [], []>} : vector<4x64xbf16>, vector<64x8xbf16>, vector<4x8xf32> -> vector<4x8xf32>
      %143 = arith.addf %136, %142 : vector<4x8xf32>
      %c0_117 = arith.constant 0 : index
      %144 = arith.index_cast %122 : i32 to index
      %c3_118 = arith.constant 3 : index
      %c0_119 = arith.constant 0 : index
      %145 = vector.load %arg2[%c0_117, %144, %c3_118, %c0_119] : memref<1x8x8x64xbf16, #tpu.memory_space<vmem>>, vector<1x1x4x64xbf16>
      %146 = vector.shape_cast %145 : vector<1x1x4x64xbf16> to vector<4x64xbf16>
      %c18 = arith.constant 18 : index
      %c0_120 = arith.constant 0 : index
      %c0_121 = arith.constant 0 : index
      %147 = vector.load %arg3[%c18, %c0_120, %c0_121] : memref<25x64x8xbf16, #tpu.memory_space<vmem>>, vector<1x64x8xbf16>
      %148 = vector.shape_cast %147 : vector<1x64x8xbf16> to vector<64x8xbf16>
      %cst_122 = arith.constant dense<0.000000e+00> : vector<4x8xf32>
      %149 = tpu.matmul %146, %148, %cst_122 {dimension_numbers = #tpu.dot_dimension_numbers<[1], [0], [0], [1], [0, 0, 1, 1], [], []>} : vector<4x64xbf16>, vector<64x8xbf16>, vector<4x8xf32> -> vector<4x8xf32>
      %150 = arith.addf %143, %149 : vector<4x8xf32>
      %c0_123 = arith.constant 0 : index
      %151 = arith.index_cast %122 : i32 to index
      %c4_124 = arith.constant 4 : index
      %c0_125 = arith.constant 0 : index
      %152 = vector.load %arg2[%c0_123, %151, %c4_124, %c0_125] : memref<1x8x8x64xbf16, #tpu.memory_space<vmem>>, vector<1x1x4x64xbf16>
      %153 = vector.shape_cast %152 : vector<1x1x4x64xbf16> to vector<4x64xbf16>
      %c19 = arith.constant 19 : index
      %c0_126 = arith.constant 0 : index
      %c0_127 = arith.constant 0 : index
      %154 = vector.load %arg3[%c19, %c0_126, %c0_127] : memref<25x64x8xbf16, #tpu.memory_space<vmem>>, vector<1x64x8xbf16>
      %155 = vector.shape_cast %154 : vector<1x64x8xbf16> to vector<64x8xbf16>
      %cst_128 = arith.constant dense<0.000000e+00> : vector<4x8xf32>
      %156 = tpu.matmul %153, %155, %cst_128 {dimension_numbers = #tpu.dot_dimension_numbers<[1], [0], [0], [1], [0, 0, 1, 1], [], []>} : vector<4x64xbf16>, vector<64x8xbf16>, vector<4x8xf32> -> vector<4x8xf32>
      %157 = arith.addf %150, %156 : vector<4x8xf32>
      %158 = arith.addi %0, %arg6 : i32
      %c4_i32_129 = arith.constant 4 : i32
      %159 = arith.addi %158, %c4_i32_129 : i32
      %c7_i32_130 = arith.constant 7 : i32
      %160 = arith.minsi %159, %c7_i32_130 : i32
      %c0_131 = arith.constant 0 : index
      %161 = arith.index_cast %160 : i32 to index
      %c0_132 = arith.constant 0 : index
      %c0_133 = arith.constant 0 : index
      %162 = vector.load %arg2[%c0_131, %161, %c0_132, %c0_133] : memref<1x8x8x64xbf16, #tpu.memory_space<vmem>>, vector<1x1x4x64xbf16>
      %163 = vector.shape_cast %162 : vector<1x1x4x64xbf16> to vector<4x64xbf16>
      %c20 = arith.constant 20 : index
      %c0_134 = arith.constant 0 : index
      %c0_135 = arith.constant 0 : index
      %164 = vector.load %arg3[%c20, %c0_134, %c0_135] : memref<25x64x8xbf16, #tpu.memory_space<vmem>>, vector<1x64x8xbf16>
      %165 = vector.shape_cast %164 : vector<1x64x8xbf16> to vector<64x8xbf16>
      %cst_136 = arith.constant dense<0.000000e+00> : vector<4x8xf32>
      %166 = tpu.matmul %163, %165, %cst_136 {dimension_numbers = #tpu.dot_dimension_numbers<[1], [0], [0], [1], [0, 0, 1, 1], [], []>} : vector<4x64xbf16>, vector<64x8xbf16>, vector<4x8xf32> -> vector<4x8xf32>
      %167 = arith.addf %157, %166 : vector<4x8xf32>
      %c0_137 = arith.constant 0 : index
      %168 = arith.index_cast %160 : i32 to index
      %c1_138 = arith.constant 1 : index
      %c0_139 = arith.constant 0 : index
      %169 = vector.load %arg2[%c0_137, %168, %c1_138, %c0_139] : memref<1x8x8x64xbf16, #tpu.memory_space<vmem>>, vector<1x1x4x64xbf16>
      %170 = vector.shape_cast %169 : vector<1x1x4x64xbf16> to vector<4x64xbf16>
      %c21 = arith.constant 21 : index
      %c0_140 = arith.constant 0 : index
      %c0_141 = arith.constant 0 : index
      %171 = vector.load %arg3[%c21, %c0_140, %c0_141] : memref<25x64x8xbf16, #tpu.memory_space<vmem>>, vector<1x64x8xbf16>
      %172 = vector.shape_cast %171 : vector<1x64x8xbf16> to vector<64x8xbf16>
      %cst_142 = arith.constant dense<0.000000e+00> : vector<4x8xf32>
      %173 = tpu.matmul %170, %172, %cst_142 {dimension_numbers = #tpu.dot_dimension_numbers<[1], [0], [0], [1], [0, 0, 1, 1], [], []>} : vector<4x64xbf16>, vector<64x8xbf16>, vector<4x8xf32> -> vector<4x8xf32>
      %174 = arith.addf %167, %173 : vector<4x8xf32>
      %c0_143 = arith.constant 0 : index
      %175 = arith.index_cast %160 : i32 to index
      %c2_144 = arith.constant 2 : index
      %c0_145 = arith.constant 0 : index
      %176 = vector.load %arg2[%c0_143, %175, %c2_144, %c0_145] : memref<1x8x8x64xbf16, #tpu.memory_space<vmem>>, vector<1x1x4x64xbf16>
      %177 = vector.shape_cast %176 : vector<1x1x4x64xbf16> to vector<4x64xbf16>
      %c22 = arith.constant 22 : index
      %c0_146 = arith.constant 0 : index
      %c0_147 = arith.constant 0 : index
      %178 = vector.load %arg3[%c22, %c0_146, %c0_147] : memref<25x64x8xbf16, #tpu.memory_space<vmem>>, vector<1x64x8xbf16>
      %179 = vector.shape_cast %178 : vector<1x64x8xbf16> to vector<64x8xbf16>
      %cst_148 = arith.constant dense<0.000000e+00> : vector<4x8xf32>
      %180 = tpu.matmul %177, %179, %cst_148 {dimension_numbers = #tpu.dot_dimension_numbers<[1], [0], [0], [1], [0, 0, 1, 1], [], []>} : vector<4x64xbf16>, vector<64x8xbf16>, vector<4x8xf32> -> vector<4x8xf32>
      %181 = arith.addf %174, %180 : vector<4x8xf32>
      %c0_149 = arith.constant 0 : index
      %182 = arith.index_cast %160 : i32 to index
      %c3_150 = arith.constant 3 : index
      %c0_151 = arith.constant 0 : index
      %183 = vector.load %arg2[%c0_149, %182, %c3_150, %c0_151] : memref<1x8x8x64xbf16, #tpu.memory_space<vmem>>, vector<1x1x4x64xbf16>
      %184 = vector.shape_cast %183 : vector<1x1x4x64xbf16> to vector<4x64xbf16>
      %c23 = arith.constant 23 : index
      %c0_152 = arith.constant 0 : index
      %c0_153 = arith.constant 0 : index
      %185 = vector.load %arg3[%c23, %c0_152, %c0_153] : memref<25x64x8xbf16, #tpu.memory_space<vmem>>, vector<1x64x8xbf16>
      %186 = vector.shape_cast %185 : vector<1x64x8xbf16> to vector<64x8xbf16>
      %cst_154 = arith.constant dense<0.000000e+00> : vector<4x8xf32>
      %187 = tpu.matmul %184, %186, %cst_154 {dimension_numbers = #tpu.dot_dimension_numbers<[1], [0], [0], [1], [0, 0, 1, 1], [], []>} : vector<4x64xbf16>, vector<64x8xbf16>, vector<4x8xf32> -> vector<4x8xf32>
      %188 = arith.addf %181, %187 : vector<4x8xf32>
      %c0_155 = arith.constant 0 : index
      %189 = arith.index_cast %160 : i32 to index
      %c4_156 = arith.constant 4 : index
      %c0_157 = arith.constant 0 : index
      %190 = vector.load %arg2[%c0_155, %189, %c4_156, %c0_157] : memref<1x8x8x64xbf16, #tpu.memory_space<vmem>>, vector<1x1x4x64xbf16>
      %191 = vector.shape_cast %190 : vector<1x1x4x64xbf16> to vector<4x64xbf16>
      %c24 = arith.constant 24 : index
      %c0_158 = arith.constant 0 : index
      %c0_159 = arith.constant 0 : index
      %192 = vector.load %arg3[%c24, %c0_158, %c0_159] : memref<25x64x8xbf16, #tpu.memory_space<vmem>>, vector<1x64x8xbf16>
      %193 = vector.shape_cast %192 : vector<1x64x8xbf16> to vector<64x8xbf16>
      %cst_160 = arith.constant dense<0.000000e+00> : vector<4x8xf32>
      %194 = tpu.matmul %191, %193, %cst_160 {dimension_numbers = #tpu.dot_dimension_numbers<[1], [0], [0], [1], [0, 0, 1, 1], [], []>} : vector<4x64xbf16>, vector<64x8xbf16>, vector<4x8xf32> -> vector<4x8xf32>
      %195 = arith.addf %188, %194 : vector<4x8xf32>
      %cst_161 = arith.constant 0.000000e+00 : f32
      %196 = vector.broadcast %cst_161 : f32 to vector<4x8xf32>
      %197 = arith.maximumf %195, %196 : vector<4x8xf32>
      %198 = arith.truncf %197 : vector<4x8xf32> to vector<4x8xbf16>
      %c0_162 = arith.constant 0 : index
      %199 = arith.index_cast %arg6 : i32 to index
      %c0_163 = arith.constant 0 : index
      %c0_164 = arith.constant 0 : index
      %200 = vector.load %arg5[%c0_162, %199, %c0_163, %c0_164] : memref<1x4x4x8xbf16, #tpu.memory_space<vmem>>, vector<1x1x4x8xbf16>
      %201 = vector.shape_cast %200 : vector<1x1x4x8xbf16> to vector<4x8xbf16>
      %202 = vector.shape_cast %198 : vector<4x8xbf16> to vector<1x1x4x8xbf16>
      tpu.vector_store %arg5[%c0_162, %199, %c0_163, %c0_164], %202 {strides = array<i32>} : memref<1x4x4x8xbf16, #tpu.memory_space<vmem>>, vector<1x1x4x8xbf16>,
    }
    %c4_i32_2 = arith.constant 4 : i32
    return
  }
  func.func @transform_0(%arg0: i32, %arg1: i32) -> (i32, i32, i32, i32) {
    %c0_i32 = arith.constant 0 : i32
    %c0_i32_0 = arith.constant 0 : i32
    %c0_i32_1 = arith.constant 0 : i32
    %c0_i32_2 = arith.constant 0 : i32
    return %arg0, %c0_i32, %c0_i32_0, %c0_i32_1 : i32, i32, i32, i32
  }
  func.func @transform_1(%arg0: i32, %arg1: i32) -> (i32, i32, i32) {
    %c0_i32 = arith.constant 0 : i32
    %c0_i32_0 = arith.constant 0 : i32
    %c0_i32_1 = arith.constant 0 : i32
    %c0_i32_2 = arith.constant 0 : i32
    return %c0_i32, %c0_i32_0, %c0_i32_1 : i32, i32, i32
  }
  func.func @transform_2(%arg0: i32, %arg1: i32) -> (i32, i32) {
    %c0_i32 = arith.constant 0 : i32
    %c0_i32_0 = arith.constant 0 : i32
    %c0_i32_1 = arith.constant 0 : i32
    return %c0_i32, %c0_i32_0 : i32, i32
  }
  func.func @transform_3(%arg0: i32, %arg1: i32) -> (i32, i32, i32, i32) {
    %c0_i32 = arith.constant 0 : i32
    %c0_i32_0 = arith.constant 0 : i32
    %c0_i32_1 = arith.constant 0 : i32
    return %arg0, %arg1, %c0_i32, %c0_i32_0 : i32, i32, i32, i32
  }
}

</mosaic_0001>

<bundles_post_ra>
// kernel: dmcnn_forward.2
= control target key start
LH: loop header
LB: loop body
LE: loop exit
PB: predicated region body
PF: predicated region fallthrough
CT: control target
= control target key end

     0   :  { %s746_s18 = smov 0   ;;  %s845_s0 = inlined_call_operand.vmem [shape: bf16[128,243], index: 0, kind: input, shape index: {}]   ;;  %s846_s1 = inlined_call_operand.vmem [shape: bf16[243,128], index: 1, kind: input, shape index: {}]   ;;  %s847_s2 = inlined_call_operand.vmem [shape: f32[1,128], index: 2, kind: input, shape index: {}]   ;;  %s848_s3 = inlined_call_operand.vmem [shape: bf16[128,64], index: 3, kind: input, shape index: {}]   ;;  %s849_s4 = inlined_call_operand.vmem [shape: f32[1,64], index: 4, kind: input, shape index: {}]   ;;  %s850_s5 = inlined_call_operand.vmem [shape: bf16[128,64], index: 5, kind: output, shape index: {}]  }
   0x1 LB: > { %s557_s19 = sadd.s32 4294967295, %s713_s18   ;;  %p561_p0 = scmp.ge.s32.totalorder %s713_s18, 1  ;;  %s713_s18 = sphi %s746_s18, %s15_s18  }
   0x2   : > { %p189_p1 = scmp.lt.s32.totalorder %s713_s18, 9 }
   0x4   : > { %p190_p2 = pnand %p561_p0, %p189_p1 }
   0x5   : > { %s562_s9 = sshll.u32 (!%p190_p2), %s557_s19, 1 }
   0x6   : > { %193 = sbr.rel (%p190_p2) target bundleno = 337 (0x151), region = 40  ;;  %p219_p3 = scmp.lt.s32.totalorder (!%p190_p2), %s562_s9, 15 }
   0xb   : > { %v680_v0 = vld [vmem:[%s846_s1 + $0x38] sm:$0xff]  ;;  %vm374_vm0 = vcmask 1040384   ;;  %vm375_vm1 = vcmask 1041408   ;;  %v679_v3 = vld [vmem:[%s846_s1 + $0x30] sm:$0xff]  ;;  %v715_v4 = vmov 65535   ;;  %v678_v9 = vld [vmem:[%s846_s1 + $0x28] sm:$0xff] }
   0xc   : > { %v263_v1 = vld [vmem:[%s846_s1 + $0x78] sm:$0x3]  ;;  %381 = vmatpush.bf16.msra.mxu0 %v680_v0  ;;  %v376_v5 = vsel %vm374_vm0, 4294967295, %v715_v4  ;;  %v687_v11 = vld [vmem:[%s846_s1 + $0x70] sm:$0xff]  ;;  %v677_v13 = vld [vmem:[%s846_s1 + $0x20] sm:$0xff]  ;;  %s852_s9 = smov (!%p219_p3, %s562_s9), 15 }
   0xd   : > { %v338_v2 = vunpack.c.l.b16 %v263_v1  ;;  %v377_v7 = vsel %vm375_vm1, %v376_v5, 0  ;;  %v695_v10 = vld [vmem:[%s848_s3 + $0x38] sm:$0xff]  ;;  %v694_v12 = vld [vmem:[%s848_s3 + $0x30] sm:$0xff]  ;;  %v686_v14 = vld [vmem:[%s846_s1 + $0x68] sm:$0xff]  ;;  %s670_s25 = sshll.u32 %s852_s9, 3  ;;  %vm370_vm2 = vcmask 941056  }
   0xe   : > { %480 = vmatpush.bf16.msra.mxu2 %v695_v10  ;;  %v693_v15 = vld [vmem:[%s848_s3 + $0x28] sm:$0xff]  ;;  %v676_v16 = vld [vmem:[%s846_s1 + $0x18] sm:$0xff]  ;;  %v685_v17 = vld [vmem:[%s846_s1 + $0x60] sm:$0xff]  ;;  %s223_s7 = scalar_lea.vmem %s845_s0, %s670_s25  ;;  %s566_s30 = sshll.u32 %s852_s9, 2  ;;  %vm498_vm3 = vcmask 519168  }
   0xf   : > { %v354_v6 = vpack.c.b16 %v338_v2, %v338_v2  ;;  %v675_v18 = vld [vmem:[%s846_s1 + $0x10] sm:$0xff]  ;;  %v684_v19 = vld [vmem:[%s846_s1 + $0x58] sm:$0xff]  ;;  %v674_v20 = vld [vmem:[%s846_s1 + $0x8] sm:$0xff]  ;;  %s229_s8 = scalar_lea.vmem %s850_s5, %s566_s30 }
  0x10   : > { %382 = vmatpush.bf16.msra.mxu0 %v679_v3  ;;  %v683_v21 = vld [vmem:[%s846_s1 + $0x50] sm:$0xff]  ;;  %v673_v22 = vld [vmem:[%s846_s1] sm:$0xff]  ;;  %v672_v24 = vld [vmem:[%s223_s7 + $0x4] sm:$0xf0] }
  0x11   : > { %v379_v8 = vand.u32 %v377_v7, %v354_v6  ;;  %v569_v23 = vld [vmem:[%s223_s7] sm:$0xf]  ;;  %v682_v25 = vld [vmem:[%s846_s1 + $0x48] sm:$0xff]  ;;  %v671_v28 = vld [vmem:[%s223_s7 + $0x4] sm:$0xf] }
  0x12   : > { %481 = vmatpush.bf16.msra.mxu2 %v694_v12  ;;  %v570_v26 = vor.u32 %v672_v24, %v569_v23  ;;  %v681_v27 = vld [vmem:[%s846_s1 + $0x40] sm:$0xff]  ;;  %v571_v29 = vld [vmem:[%s223_s7 + $0x8] sm:$0xf0]  ;;  %v691_v32 = vld [vmem:[%s848_s3 + $0x18] sm:$0xff] }
  0x13   : > { %395 = vmatpush.bf16.msra.mxu1 %v379_v8  ;;  %v574_v30 = vor.u32 %v671_v28, %v571_v29  ;;  %v692_v31 = vld [vmem:[%s848_s3 + $0x20] sm:$0xff]  ;;  %v690_v33 = vld [vmem:[%s848_s3 + $0x10] sm:$0xff]  ;;  %v689_v34 = vld [vmem:[%s848_s3 + $0x8] sm:$0xff] }
  0x14   : > { %383 = vmatpush.bf16.msra.mxu0 %v678_v9  ;;  %v688_v35 = vld [vmem:[%s848_s3] sm:$0xff] }
  0x15   : > { %v705_v37 = vld [vmem:[%s847_s2] ss:$0 sm:$0xff] }
  0x16   : > { %482 = vmatpush.bf16.msra.mxu2 %v693_v15  ;;  %v706_v48 = vld [vmem:[%s849_s4] ss:$0 sm:$0xff] }
  0x17   : > { %396 = vmatpush.bf16.msra.mxu1 %v687_v11 }
  0x18   : > { %384 = vmatpush.bf16.msra.mxu0 %v677_v13 }
  0x1a   : > { %483 = vmatpush.bf16.msra.mxu2 %v692_v31 }
  0x1b   : > { %397 = vmatpush.bf16.msra.mxu1 %v686_v14 }
  0x1c   : > { %385 = vmatpush.bf16.msra.mxu0 %v676_v16 }
  0x1e   : > { %484 = vmatpush.bf16.msra.mxu2 %v691_v32 }
  0x1f   : > { %398 = vmatpush.bf16.msra.mxu1 %v685_v17 }
  0x20   : > { %386 = vmatpush.bf16.msra.mxu0 %v675_v18 }
  0x22   : > { %485 = vmatpush.bf16.msra.mxu2 %v690_v33 }
  0x23   : > { %399 = vmatpush.bf16.msra.mxu1 %v684_v19 }
  0x24   : > { %387 = vmatpush.bf16.msra.mxu0 %v674_v20 }
  0x26   : > { %486 = vmatpush.bf16.msra.mxu2 %v689_v34 }
  0x27   : > { %400 = vmatpush.bf16.msra.mxu1 %v683_v21 }
  0x28   : > { %388 = vmatpush.bf16.msra.mxu0 %v673_v22 }
  0x2a   : > { %487 = vmatpush.bf16.msra.mxu2 %v688_v35 }
  0x2b   : > { %401 = vmatpush.bf16.msra.mxu1 %v682_v25  ;;  %389 = vmatmul.bf16.vlgmr.msra.gmra.mxu0 %v570_v26 }
  0x2f   : > { %402 = vmatpush.bf16.msra.mxu1 %v681_v27 }
  0x32   : > { %635 = vmatmul.msk.bf16.vlgmr.msra.gmra.mxu1 %vm370_vm2, %v574_v30 }
  0xa8   : > { %v390_v36 = vpop.f32.mrf.mxu0 }
  0xa9   : > { %v391_v39 = vadd.f32 %v705_v37, %v390_v36 }
  0xaf   : > { %v404_v38 = vpop.f32.mrf.mxu1 }
  0xb0   : > { %v392_v40 = vpop.f32.mrf.mxu0  ;;  %v405_v41 = vadd.f32 %v404_v38, %v391_v39 }
  0xb1   : > { %v393_v42 = vadd.f32 %v705_v37, %v392_v40 }
  0xb2   : > { %v409_v45 = vmax.f32 %v405_v41, 0.0 }
  0xb7   : > { %v406_v43 = vpop.f32.mrf.mxu1 }
  0xb8   : > { %v407_v44 = vadd.f32 %v406_v43, %v393_v42 }
  0xba   : > { %v410_v46 = vmax.f32 %v407_v44, 0.0 }
  0xbc   : > { %v411_v47 = vpack.c.bf16 %v410_v46, %v409_v45 }
  0xbe   : > { %488 = vmatmul.bf16.vlgmr.msra.gmra.mxu2 %v411_v47 }
 0x141   : > { %v489_v49 = vpop.f32.mrf.mxu2 }
 0x142   : > { %v490_v50 = vadd.f32 %v706_v48, %v489_v49 }
 0x144   : > { %v494_v51 = vmax.f32 %v490_v50, 0.0 }
 0x146   : > { %v496_v52 = vpack.c.bf16 %v494_v51, %v494_v51 }
 0x148   : > { %499 = vst.msk [vmem:[%s229_s8] sm:$0xf] %vm498_vm3, %v496_v52 }
 0x149   : > { %v491_v53 = vpop.f32.mrf.mxu2 }
 0x14a   : > { %v492_v54 = vadd.f32 %v706_v48, %v491_v53 }
 0x14c   : > { %v495_v55 = vmax.f32 %v492_v54, 0.0 }
 0x14e   : > { %v497_v56 = vpack.c.bf16 %v495_v55, %v495_v55 }
 0x150   : > { %500 = vst.msk [vmem:[%s229_s8 + $0x4] sm:$0xf] %vm498_vm3, %v497_v56 }
 0x151 PF: > { %s15_s18 = sadd.s32 1, %s713_s18  }
 0x152   : > { %p12_p4 = scmp.ge.s32.totalorder %s15_s18, 10  }
 0x154   :  { %14 = sbr.rel (!%p12_p4) target bundleno = 1 (0x1), region = 70 }

// kernel: dmcnn_forward.3
= control target key start
LH: loop header
LB: loop body
LE: loop exit
PB: predicated region body
PF: predicated region fallthrough
CT: control target
= control target key end

     0   :  { %s2576_s12 = smov 0   ;;  %s2578_s13 = smov 0   ;;  %s3030_s0 = inlined_call_operand.vmem [shape: bf16[2,8,8,64], index: 0, kind: input, shape index: {}]   ;;  %s3031_s1 = inlined_call_operand.vmem [shape: bf16[25,64,8], index: 1, kind: input, shape index: {}]   ;;  %s3032_s2 = inlined_call_operand.vmem [shape: f32[1,8], index: 2, kind: input, shape index: {}]   ;;  %s3033_s3 = inlined_call_operand.vmem [shape: bf16[2,4,4,8], index: 3, kind: output, shape index: {}]  }
   0x1   :  { %s2580_s14 = smov 0  }
   0x2 LB: > { %s25_s15 = sadd.s32 1, %s2546_s13  ;;  %p1760_p0 = scmp.ge.s32.totalorder %s2550_s14, 1  ;;  %s2550_s14 = sphi %s2580_s14, %s13_s14   ;;  %s2546_s13 = sphi %s2578_s13, %s3039_s13   ;;  %s2542_s12 = sphi %s2576_s12, %s3038_s12  }
   0x3   : > { %p27_p1 = scmp.ge.s32.totalorder %s25_s15, 2  ;;  %p151_p2 = scmp.lt.s32.totalorder %s2550_s14, 3 }
   0x5   : > { %s3041_s15 = smov (%p27_p1, %s25_s15), 0  ;;  %p152_p3 = pnand %p1760_p0, %p151_p2 }
   0x6   : > { %p179_p4 = scmp.lt.s32.totalorder (!%p152_p3), %s2542_s12, 1  ;;  %s2609_s26 = smov (!%p152_p3), 0  }
   0x7   : > { %155 = sbr.rel (%p152_p3) target bundleno = 261 (0x105), region = 32 }
   0xc   : > { %v2597_v0 = vld [vmem:[%s3032_s2] sm:$0x1]  ;;  %s3043_s12 = smov (!%p179_p4, %s2542_s12), 1 }
   0xd   : > { %s2390_s18 = sshll.u32 %s3043_s12, 5  ;;  %s2391_s19 = sshll.u32 %s3043_s12, 3 }
   0xe   : > { %s2602_s22 = scalar_lea.vmem %s3030_s0, %s2390_s18  ;;  %s2607_s25 = scalar_lea.vmem %s3033_s3, %s2391_s19 }
   0xf LB: >> { %v2395_v1 = vld [vmem:[%s3031_s1 + $0x18] sm:$0xff]  ;;  %v2394_v5 = vld [vmem:[%s3031_s1 + $0x10] sm:$0xff]  ;;  %p208_p5 = scmp.lt.s32.totalorder %s2554_s26, 7  ;;  %s2634_s12 = sadd.s32 1, %s2554_s26   ;;  %v2393_v9 = vld [vmem:[%s3031_s1 + $0x8] sm:$0xff]  ;;  %vm245_vm0 = vcmask 523264   ;;  %s2554_s26 = sphi %s2609_s26, %s3037_s26  }
  0x10   : >> { %v2403_v2 = vld [vmem:[%s3031_s1 + $0x58] sm:$0xff]  ;;  %253 = vmatpush.bf16.msra.mxu0 %v2395_v1  ;;  %v2402_v6 = vld [vmem:[%s3031_s1 + $0x50] sm:$0xff]  ;;  %p497_p6 = scmp.lt.s32.totalorder %s2634_s12, 7  ;;  %v2401_v10 = vld [vmem:[%s3031_s1 + $0x48] sm:$0xff]  ;;  %s785_s23 = sadd.s32 2, %s2554_s26  ;;  %vm1656_vm1 = vcmask 58368  }
  0x11   : >> { %v2407_v3 = vld [vmem:[%s3031_s1 + $0x78] sm:$0xff]  ;;  %369 = vmatpush.bf16.msra.mxu2 %v2403_v2  ;;  %v2406_v7 = vld [vmem:[%s3031_s1 + $0x70] sm:$0xff]  ;;  %s209_s20 = scalar_select %p208_p5, %s2554_s26, 7  ;;  %v2405_v11 = vld [vmem:[%s3031_s1 + $0x68] sm:$0xff] }
  0x12   : >> { %v2399_v4 = vld [vmem:[%s3031_s1 + $0x38] sm:$0xff]  ;;  %431 = vmatpush.bf16.msra.mxu3 %v2407_v3  ;;  %v2398_v8 = vld [vmem:[%s3031_s1 + $0x30] sm:$0xff]  ;;  %s498_s21 = scalar_select %p497_p6, %s2634_s12, 7  ;;  %v2397_v12 = vld [vmem:[%s3031_s1 + $0x28] sm:$0xff] }
  0x13   : >> { %314 = vmatpush.bf16.msra.mxu1 %v2399_v4  ;;  %s1765_s29 = sshll.u32 %s209_s20, 2  ;;  %v2392_v18 = vld [vmem:[%s3031_s1] sm:$0xff]  ;;  %v2411_v25 = vld [vmem:[%s3031_s1 + $0x98] sm:$0xff]  ;;  %p2695_p7 = scmp.lt.s32.totalorder %s785_s23, 7  ;;  %v2410_v41 = vld [vmem:[%s3031_s1 + $0x90] sm:$0xff] }
  0x14   : >> { %254 = vmatpush.bf16.msra.mxu0 %v2394_v5  ;;  %s2658_s7 = scalar_lea.vmem %s2602_s22, %s1765_s29  ;;  %s1883_s8 = sshll.u32 %s498_s21, 2  ;;  %v2400_v19 = vld [vmem:[%s3031_s1 + $0x40] sm:$0xff]  ;;  %v2419_v26 = vld [vmem:[%s3031_s1 + $0xd8] sm:$0xff]  ;;  %v2418_v43 = vld [vmem:[%s3031_s1 + $0xd0] sm:$0xff] }
  0x15   : >> { %370 = vmatpush.bf16.msra.mxu2 %v2402_v6  ;;  %v324_v13 = vld [vmem:[%s2658_s7] sm:$0x6]  ;;  %s2664_s9 = scalar_lea.vmem %s2602_s22, %s1883_s8  ;;  %v2423_v32 = vld [vmem:[%s3031_s1 + $0xf8] sm:$0xff]  ;;  %v2422_v46 = vld [vmem:[%s3031_s1 + $0xf0] sm:$0xff]  ;;  %s3045_s23 = smov (!%p2695_p7, %s785_s23), 7 }
  0x16   : >> { %432 = vmatpush.bf16.msra.mxu3 %v2406_v7  ;;  %v379_v14 = vld [vmem:[%s2658_s7] sm:$0xe]  ;;  %v335_v15 = vunpack.c.l.b16 %v324_v13  ;;  %v2415_v36 = vld [vmem:[%s3031_s1 + $0xb8] sm:$0xff]  ;;  %v2414_v47 = vld [vmem:[%s3031_s1 + $0xb0] sm:$0xff]  ;;  %s2009_s6 = sshll.u32 %s3045_s23, 2  ;;  %p199_p10 = scmp.ge.s32.totalorder %s2634_s12, 4  }
  0x17   : >> { %315 = vmatpush.bf16.msra.mxu1 %v2398_v8  ;;  %v390_v16 = vunpack.c.l.b16 %v379_v14  ;;  %v263_v17 = vld [vmem:[%s2658_s7] sm:$0x7]  ;;  %v2409_v49 = vld [vmem:[%s3031_s1 + $0x88] sm:$0xff]  ;;  %v2427_v62 = vld [vmem:[%s3031_s1 + $0x118] sm:$0xff]  ;;  %s2743_s19 = scalar_lea.vmem %s2602_s22, %s2009_s6 }
  0x18   : >> { %255 = vmatpush.bf16.msra.mxu0 %v2393_v9  ;;  %v274_v20 = vunpack.c.l.b16 %v263_v17  ;;  %v2404_v21 = vld [vmem:[%s3031_s1 + $0x60] sm:$0xff]  ;;  %v336_v23 = vpack.c.b16 %v335_v15, %v335_v15  ;;  %v2417_v51 = vld [vmem:[%s3031_s1 + $0xc8] sm:$0xff]  ;;  %v2435_v4 = vld [vmem:[%s3031_s1 + $0x158] sm:$0xff] }
  0x19   : >> { %371 = vmatpush.bf16.msra.mxu2 %v2401_v10  ;;  %v2396_v22 = vld [vmem:[%s3031_s1 + $0x20] sm:$0xff]  ;;  %v391_v24 = vpack.c.b16 %v390_v16, %v390_v16  ;;  %v2421_v54 = vld [vmem:[%s3031_s1 + $0xe8] sm:$0xff]  ;;  %v2439_v5 = vld [vmem:[%s3031_s1 + $0x178] sm:$0xff] }
  0x1a   : >> { %433 = vmatpush.bf16.msra.mxu3 %v2405_v11  ;;  %v275_v27 = vpack.c.b16 %v274_v20, %v274_v20  ;;  %v552_v28 = vld [vmem:[%s2664_s9] sm:$0x7]  ;;  %v337_v29 = vrot.slane %v336_v23, 1  ;;  %v2413_v55 = vld [vmem:[%s3031_s1 + $0xa8] sm:$0xff]  ;;  %v2431_v6 = vld [vmem:[%s3031_s1 + $0x138] sm:$0xff] }
  0x1b   : >> { %316 = vmatpush.bf16.msra.mxu1 %v2397_v12  ;;  %v393_v30 = vshrl.u32 %v391_v24, 16  ;;  %v396_v31 = vshll.u32 %v391_v24, 16  ;;  %v212_v33 = vld [vmem:[%s2658_s7] sm:$0x3]  ;;  %v563_v37 = vunpack.c.l.b16 %v552_v28  ;;  %v441_v48 = vld [vmem:[%s2658_s7] sm:$0xc] }
  0x1c   : >> { %256 = vmatpush.bf16.msra.mxu0 %v2392_v18  ;;  %v277_v34 = vshrl.u32 %v275_v27, 16  ;;  %v279_v35 = vshll.u32 %v275_v27, 16  ;;  %v613_v50 = vld [vmem:[%s2664_s9] sm:$0x6]  ;;  %v452_v52 = vunpack.c.l.b16 %v441_v48  ;;  %v2426_v11 = vld [vmem:[%s3031_s1 + $0x110] sm:$0xff]  ;;  %v2433_v20 = vld [vmem:[%s3031_s1 + $0x148] sm:$0xff] }
  0x1d   : >> { %372 = vmatpush.bf16.msra.mxu2 %v2400_v19  ;;  %v395_v38 = vrot.slane %v393_v30, 1  ;;  %v398_v39 = vrot.slane %v396_v31, 2  ;;  %v564_v44 = vpack.c.b16 %v563_v37, %v563_v37  ;;  %v624_v56 = vunpack.c.l.b16 %v613_v50  ;;  %v2408_v57 = vld [vmem:[%s3031_s1 + $0x80] sm:$0xff]  ;;  %v2434_v13 = vld [vmem:[%s3031_s1 + $0x150] sm:$0xff]  ;;  %v2425_v19 = vld [vmem:[%s3031_s1 + $0x108] sm:$0xff]  ;;  %s1074_s7 = sadd.s32 3, %s2554_s26 }
  0x1e   : >> { %434 = vmatpush.bf16.msra.mxu3 %v2404_v21  ;;  %v281_v40 = vrot.slane %v279_v35, 1  ;;  %v2416_v58 = vld [vmem:[%s3031_s1 + $0xc0] sm:$0xff]  ;;  %v453_v59 = vpack.c.b16 %v452_v52, %v452_v52  ;;  %v2438_v15 = vld [vmem:[%s3031_s1 + $0x170] sm:$0xff]  ;;  %v2429_v23 = vld [vmem:[%s3031_s1 + $0x128] sm:$0xff]  ;;  %p2831_p8 = scmp.lt.s32.totalorder %s1074_s7, 7 }
  0x1f   : >> { %317 = vmatpush.bf16.msra.mxu1 %v2396_v22  ;;  %1782 = vmatmul.msk.bf16.vlgmr.msra.gmra.mxu0 %vm245_vm0, %v212_v33  ;;  %v399_v42 = vor.u32 %v398_v39, %v395_v38  ;;  %v568_v53 = vshll.u32 %v564_v44, 16  ;;  %v566_v60 = vshrl.u32 %v564_v44, 16  ;;  %v2420_v63 = vld [vmem:[%s3031_s1 + $0xe0] sm:$0xff]  ;;  %v625_v3 = vpack.c.b16 %v624_v56, %v624_v56  ;;  %v2430_v17 = vld [vmem:[%s3031_s1 + $0x130] sm:$0xff]  ;;  %v2437_v22 = vld [vmem:[%s3031_s1 + $0x168] sm:$0xff] }
  0x20   : >> { %486 = vmatpush.bf16.msrb.mxu0 %v2411_v25  ;;  %1832 = vmatmul.msk.bf16.vlgmr.msra.gmra.mxu2 %vm245_vm0, %v337_v29  ;;  %v282_v45 = vor.u32 %v281_v40, %v277_v34  ;;  %v2412_v1 = vld [vmem:[%s3031_s1 + $0xa0] sm:$0xff]  ;;  %v454_v8 = vrot.slane %v453_v59, 2  ;;  %v2443_v29 = vld [vmem:[%s3031_s1 + $0x198] sm:$0xff]  ;;  %v2446_v48 = vld [vmem:[%s3031_s1 + $0x1b0] sm:$0xff]  ;;  %s3047_s7 = smov (!%p2831_p8, %s1074_s7), 7 }
  0x21   : >> { %603 = vmatpush.bf16.msrb.mxu2 %v2419_v26  ;;  %1857 = vmatmul.msk.bf16.vlgmr.msra.gmra.mxu3 %vm245_vm0, %v399_v42  ;;  %v570_v61 = vrot.slane %v568_v53, 1  ;;  %v668_v2 = vld [vmem:[%s2664_s9] sm:$0xe]  ;;  %v626_v12 = vrot.slane %v625_v3, 1  ;;  %v2455_v37 = vld [vmem:[%s3031_s1 + $0x1f8] sm:$0xff]  ;;  %v2441_v50 = vld [vmem:[%s3031_s1 + $0x188] sm:$0xff] }
  0x22   : >> { %658 = vmatpush.bf16.msrb.mxu3 %v2423_v32  ;;  %1807 = vmatmul.msk.bf16.vlgmr.msra.gmra.mxu1 %vm245_vm0, %v282_v45  ;;  %v841_v7 = vld [vmem:[%s2743_s19] sm:$0x7]  ;;  %v679_v10 = vunpack.c.l.b16 %v668_v2  ;;  %v2451_v32 = vld [vmem:[%s3031_s1 + $0x1d8] sm:$0xff]  ;;  %v2449_v52 = vld [vmem:[%s3031_s1 + $0x1c8] sm:$0xff] }
  0x23   : >> { %542 = vmatpush.bf16.msrb.mxu1 %v2415_v36  ;;  %v571_v9 = vor.u32 %v570_v61, %v566_v60  ;;  %v852_v14 = vunpack.c.l.b16 %v841_v7  ;;  %v501_v16 = vld [vmem:[%s2664_s9] sm:$0x3]  ;;  %v730_v26 = vld [vmem:[%s2664_s9] sm:$0xc]  ;;  %v2447_v38 = vld [vmem:[%s3031_s1 + $0x1b8] sm:$0xff]  ;;  %s2135_s9 = sshll.u32 %s3047_s7, 2 }
  0x24   : >> { %487 = vmatpush.bf16.msrb.mxu0 %v2410_v41  ;;  %v680_v18 = vpack.c.b16 %v679_v10, %v679_v10  ;;  %v2424_v27 = vld [vmem:[%s3031_s1 + $0x100] sm:$0xff]  ;;  %v741_v33 = vunpack.c.l.b16 %v730_v26  ;;  %v2442_v41 = vld [vmem:[%s3031_s1 + $0x190] sm:$0xff]  ;;  %v2459_v60 = vld [vmem:[%s3031_s1 + $0x218] sm:$0xff]  ;;  %s2883_s7 = scalar_lea.vmem %s2602_s22, %s2135_s9 }
  0x25   : >> { %604 = vmatpush.bf16.msrb.mxu2 %v2418_v43  ;;  %v853_v21 = vpack.c.b16 %v852_v14, %v852_v14  ;;  %v2432_v28 = vld [vmem:[%s3031_s1 + $0x140] sm:$0xff]  ;;  %v2450_v43 = vld [vmem:[%s3031_s1 + $0x1d0] sm:$0xff] }
  0x26   : >> { %659 = vmatpush.bf16.msrb.mxu3 %v2422_v46  ;;  %v682_v24 = vshrl.u32 %v680_v18, 16  ;;  %v685_v25 = vshll.u32 %v680_v18, 16  ;;  %v2436_v31 = vld [vmem:[%s3031_s1 + $0x160] sm:$0xff]  ;;  %v742_v42 = vpack.c.b16 %v741_v33, %v741_v33  ;;  %v2470_v14 = vld [vmem:[%s3031_s1 + $0x270] sm:$0xff]  ;;  %v2457_v18 = vld [vmem:[%s3031_s1 + $0x208] sm:$0xff] }
  0x27   : >> { %543 = vmatpush.bf16.msrb.mxu1 %v2414_v47  ;;  %v857_v30 = vshll.u32 %v853_v21, 16  ;;  %v2428_v34 = vld [vmem:[%s3031_s1 + $0x120] sm:$0xff]  ;;  %v855_v39 = vshrl.u32 %v853_v21, 16  ;;  %v2454_v47 = vld [vmem:[%s3031_s1 + $0x1f0] sm:$0xff] }
  0x28   : >> { %488 = vmatpush.bf16.msrb.mxu0 %v2409_v49  ;;  %v684_v35 = vrot.slane %v682_v24, 1  ;;  %v687_v36 = vrot.slane %v685_v25, 2  ;;  %v957_v45 = vld [vmem:[%s2743_s19] sm:$0xe]  ;;  %v2461_v24 = vld [vmem:[%s3031_s1 + $0x228] sm:$0xff] }
  0x29   : >> { %605 = vmatpush.bf16.msrb.mxu2 %v2417_v51  ;;  %v859_v40 = vrot.slane %v857_v30, 1  ;;  %v790_v46 = vld [vmem:[%s2743_s19] sm:$0x3]  ;;  %v743_v51 = vrot.slane %v742_v42, 2  ;;  %v968_v53 = vunpack.c.l.b16 %v957_v45  ;;  %v2487_v42 = vld [vmem:[%s3031_s1 + $0x2f8] sm:$0xff]  ;;  %v2482_v45 = vld [vmem:[%s3031_s1 + $0x2d0] sm:$0xff] }
  0x2a   : >> { %660 = vmatpush.bf16.msrb.mxu3 %v2421_v54  ;;  %v688_v44 = vor.u32 %v687_v36, %v684_v35  ;;  %v2453_v54 = vld [vmem:[%s3031_s1 + $0x1e8] sm:$0xff]  ;;  %v902_v56 = vld [vmem:[%s2743_s19] sm:$0x6] }
  0x2b   : >> { %544 = vmatpush.bf16.msrb.mxu1 %v2413_v55  ;;  %v860_v49 = vor.u32 %v859_v40, %v855_v39  ;;  %v2445_v55 = vld [vmem:[%s3031_s1 + $0x1a8] sm:$0xff]  ;;  %v2448_v59 = vld [vmem:[%s3031_s1 + $0x1c0] sm:$0xff]  ;;  %v969_v61 = vpack.c.b16 %v968_v53, %v968_v53 }
  0x2c   : >> { %489 = vmatpush.bf16.msrb.mxu0 %v2408_v57  ;;  %v1019_v57 = vld [vmem:[%s2743_s19] sm:$0xc]  ;;  %s1363_s19 = sadd.s32 4, %s2554_s26  ;;  %v1079_v25 = vld [vmem:[%s2883_s7] sm:$0x3]  ;;  %v2473_v53 = vld [vmem:[%s3031_s1 + $0x288] sm:$0xff] }
  0x2d   : >> { %606 = vmatpush.bf16.msrb.mxu2 %v2416_v58  ;;  %v2440_v58 = vld [vmem:[%s3031_s1 + $0x180] sm:$0xff]  ;;  %v974_v7 = vshll.u32 %v969_v61, 16  ;;  %p2903_p9 = scmp.lt.s32.totalorder %s1363_s19, 7 }
  0x2e   : >> { %661 = vmatpush.bf16.msrb.mxu3 %v2420_v63  ;;  %v1030_v63 = vunpack.c.l.b16 %v1019_v57  ;;  %v2452_v2 = vld [vmem:[%s3031_s1 + $0x1e0] sm:$0xff]  ;;  %v2477_v57 = vld [vmem:[%s3031_s1 + $0x2a8] sm:$0xff] }
  0x2f   : >> { %545 = vmatpush.bf16.msrb.mxu1 %v2412_v1  ;;  %1882 = vmatmul.msk.bf16.vlgmr.msrb.gmra.mxu0 %vm245_vm0, %v454_v8  ;;  %v2467_v1 = vld [vmem:[%s3031_s1 + $0x258] sm:$0xff]  ;;  %v2444_v3 = vld [vmem:[%s3031_s1 + $0x1a0] sm:$0xff]  ;;  %v2458_v8 = vld [vmem:[%s3031_s1 + $0x210] sm:$0xff]  ;;  %s3049_s19 = smov (!%p2903_p9, %s1363_s19), 7 }
  0x30   : >> { %720 = vmatpush.bf16.msra.mxu0 %v2427_v62  ;;  %1933 = vmatmul.msk.bf16.vlgmr.msrb.gmra.mxu2 %vm245_vm0, %v571_v9  ;;  %v913_v62 = vunpack.c.l.b16 %v902_v56  ;;  %v1031_v10 = vpack.c.b16 %v1030_v63, %v1030_v63  ;;  %v2460_v33 = vld [vmem:[%s3031_s1 + $0x220] sm:$0xff]  ;;  %s2261_s20 = sshll.u32 %s3049_s19, 2 }
  0x31   : >> { %831 = vmatpush.bf16.msra.mxu2 %v2435_v4  ;;  %1958 = vmatmul.msk.bf16.vlgmr.msrb.gmra.mxu3 %vm245_vm0, %v626_v12  ;;  %v2471_v4 = vld [vmem:[%s3031_s1 + $0x278] sm:$0xff]  ;;  %v1130_v12 = vld [vmem:[%s2883_s7] sm:$0x7]  ;;  %s2962_s29 = scalar_lea.vmem %s2602_s22, %s2261_s20 }
  0x32   : >> { %892 = vmatpush.bf16.msra.mxu3 %v2439_v5  ;;  %1908 = vmatmul.msk.bf16.vlgmr.msrb.gmra.mxu1 %vm245_vm0, %v501_v16  ;;  %v2463_v5 = vld [vmem:[%s3031_s1 + $0x238] sm:$0xff]  ;;  %v914_v9 = vpack.c.b16 %v913_v62, %v913_v62  ;;  %v1141_v21 = vunpack.c.l.b16 %v1130_v12  ;;  %v2468_v35 = vld [vmem:[%s3031_s1 + $0x260] sm:$0xff]  ;;  %v2485_v62 = vld [vmem:[%s3031_s1 + $0x2e8] sm:$0xff] }
  0x33   : >> { %775 = vmatpush.bf16.msra.mxu1 %v2431_v6  ;;  %v971_v6 = vshrl.u32 %v969_v61, 16  ;;  %v1308_v36 = vld [vmem:[%s2883_s7] sm:$0xc]  ;;  %v2490_v12 = vld [vmem:[%s3031_s1 + $0x310] sm:$0xff] }
  0x34   : >> { %721 = vmatpush.bf16.msra.mxu0 %v2426_v11  ;;  %v2466_v11 = vld [vmem:[%s3031_s1 + $0x250] sm:$0xff]  ;;  %v1419_v61 = vld [vmem:[%s2962_s29] sm:$0x7] }
  0x35   : >> { %832 = vmatpush.bf16.msra.mxu2 %v2434_v13  ;;  %v1246_v13 = vld [vmem:[%s2883_s7] sm:$0xe]  ;;  %v973_v16 = vrot.slane %v971_v6, 1  ;;  %v1430_v6 = vunpack.c.l.b16 %v1419_v61 }
  0x36   : >> { %893 = vmatpush.bf16.msra.mxu3 %v2438_v15  ;;  %v2462_v15 = vld [vmem:[%s3031_s1 + $0x230] sm:$0xff]  ;;  %v2472_v63 = vld [vmem:[%s3031_s1 + $0x280] sm:$0xff] }
  0x37   : >> { %776 = vmatpush.bf16.msra.mxu1 %v2430_v17  ;;  %v976_v17 = vrot.slane %v974_v7, 2  ;;  %v2476_v7 = vld [vmem:[%s3031_s1 + $0x2a0] sm:$0xff] }
  0x38   : >> { %722 = vmatpush.bf16.msra.mxu0 %v2425_v19  ;;  %v915_v19 = vrot.slane %v914_v9, 1  ;;  %v1480_v9 = vld [vmem:[%s2962_s29] sm:$0x6] }
  0x39   : >> { %833 = vmatpush.bf16.msra.mxu2 %v2433_v20  ;;  %v1032_v20 = vrot.slane %v1031_v10, 2  ;;  %v977_v26 = vor.u32 %v976_v17, %v973_v16  ;;  %v2489_v17 = vld [vmem:[%s3031_s1 + $0x308] sm:$0xff] }
  0x3a   : >> { %894 = vmatpush.bf16.msra.mxu3 %v2437_v22  ;;  %v1257_v22 = vunpack.c.l.b16 %v1246_v13  ;;  %v1491_v13 = vunpack.c.l.b16 %v1480_v9 }
  0x3b   : >> { %777 = vmatpush.bf16.msra.mxu1 %v2429_v23  ;;  %v2465_v23 = vld [vmem:[%s3031_s1 + $0x248] sm:$0xff] }
  0x3c   : >> { %723 = vmatpush.bf16.msra.mxu0 %v2424_v27  ;;  %v2469_v27 = vld [vmem:[%s3031_s1 + $0x268] sm:$0xff]  ;;  %v1258_v30 = vpack.c.b16 %v1257_v22, %v1257_v22 }
  0x3d   : >> { %834 = vmatpush.bf16.msra.mxu2 %v2432_v28  ;;  %v2456_v28 = vld [vmem:[%s3031_s1 + $0x200] sm:$0xff] }
  0x3e   : >> { %895 = vmatpush.bf16.msra.mxu3 %v2436_v31  ;;  %v2464_v31 = vld [vmem:[%s3031_s1 + $0x240] sm:$0xff]  ;;  %v1260_v39 = vshrl.u32 %v1258_v30, 16  ;;  %v1263_v40 = vshll.u32 %v1258_v30, 16 }
  0x3f   : >> { %778 = vmatpush.bf16.msra.mxu1 %v2428_v34  ;;  %1983 = vmatmul.msk.bf16.vlgmr.msra.gmra.mxu0 %vm245_vm0, %v688_v44  ;;  %v2483_v34 = vld [vmem:[%s3031_s1 + $0x2d8] sm:$0xff]  ;;  %v1319_v44 = vunpack.c.l.b16 %v1308_v36 }
  0x40   : >> { %947 = vmatpush.bf16.msrb.mxu0 %v2443_v29  ;;  %2034 = vmatmul.msk.bf16.vlgmr.msra.gmra.mxu2 %vm245_vm0, %v790_v46  ;;  %v1142_v29 = vpack.c.b16 %v1141_v21, %v1141_v21 }
  0x41   : >> { %1064 = vmatpush.bf16.msrb.mxu2 %v2451_v32  ;;  %2059 = vmatmul.msk.bf16.vlgmr.msra.gmra.mxu3 %vm245_vm0, %v860_v49  ;;  %v2475_v32 = vld [vmem:[%s3031_s1 + $0x298] sm:$0xff] }
  0x42   : >> { %1120 = vmatpush.bf16.msrb.mxu3 %v2455_v37  ;;  %2008 = vmatmul.msk.bf16.vlgmr.msra.gmra.mxu1 %vm245_vm0, %v743_v51  ;;  %v2479_v37 = vld [vmem:[%s3031_s1 + $0x2b8] sm:$0xff]  ;;  %v1265_v51 = vrot.slane %v1263_v40, 2 }
  0x43   : >> { %1009 = vmatpush.bf16.msrb.mxu1 %v2447_v38  ;;  %v1146_v38 = vshll.u32 %v1142_v29, 16 }
  0x44   : >> { %948 = vmatpush.bf16.msrb.mxu0 %v2442_v41  ;;  %v1191_v41 = vld [vmem:[%s2883_s7] sm:$0x6] }
  0x45   : >> { %1065 = vmatpush.bf16.msrb.mxu2 %v2450_v43  ;;  %v2474_v43 = vld [vmem:[%s3031_s1 + $0x290] sm:$0xff]  ;;  %v1202_v46 = vunpack.c.l.b16 %v1191_v41  ;;  %v1148_v49 = vrot.slane %v1146_v38, 1 }
  0x46   : >> { %1121 = vmatpush.bf16.msrb.mxu3 %v2454_v47  ;;  %v2478_v47 = vld [vmem:[%s3031_s1 + $0x2b0] sm:$0xff] }
  0x47   : >> { %1010 = vmatpush.bf16.msrb.mxu1 %v2446_v48  ;;  %v1144_v48 = vshrl.u32 %v1142_v29, 16  ;;  %v1203_v56 = vpack.c.b16 %v1202_v46, %v1202_v46 }
  0x48   : >> { %949 = vmatpush.bf16.msrb.mxu0 %v2441_v50  ;;  %v1262_v50 = vrot.slane %v1260_v39, 1 }
  0x49   : >> { %1066 = vmatpush.bf16.msrb.mxu2 %v2449_v52  ;;  %v2486_v52 = vld [vmem:[%s3031_s1 + $0x2f0] sm:$0xff] }
  0x4a   : >> { %1122 = vmatpush.bf16.msrb.mxu3 %v2453_v54  ;;  %v1320_v54 = vpack.c.b16 %v1319_v44, %v1319_v44 }
  0x4b   : >> { %1011 = vmatpush.bf16.msrb.mxu1 %v2445_v55  ;;  %v2481_v55 = vld [vmem:[%s3031_s1 + $0x2c8] sm:$0xff] }
  0x4c   : >> { %950 = vmatpush.bf16.msrb.mxu0 %v2440_v58  ;;  %v1535_v58 = vld [vmem:[%s2962_s29] sm:$0xe] }
  0x4d   : >> { %1067 = vmatpush.bf16.msrb.mxu2 %v2448_v59  ;;  %v1149_v59 = vor.u32 %v1148_v49, %v1144_v48 }
  0x4e   : >> { %1123 = vmatpush.bf16.msrb.mxu3 %v2452_v2  ;;  %v2480_v2 = vld [vmem:[%s3031_s1 + $0x2c0] sm:$0xff] }
  0x4f   : >> { %1012 = vmatpush.bf16.msrb.mxu1 %v2444_v3  ;;  %2084 = vmatmul.msk.bf16.vlgmr.msrb.gmra.mxu0 %vm245_vm0, %v915_v19  ;;  %v1546_v3 = vunpack.c.l.b16 %v1535_v58 }
  0x50   : >> { %1181 = vmatpush.bf16.msra.mxu0 %v2459_v60  ;;  %2134 = vmatmul.msk.bf16.vlgmr.msrb.gmra.mxu2 %vm245_vm0, %v1032_v20  ;;  %v1266_v60 = vor.u32 %v1265_v51, %v1262_v50 }
  0x51   : >> { %1298 = vmatpush.bf16.msra.mxu2 %v2467_v1  ;;  %2160 = vmatmul.msk.bf16.vlgmr.msrb.gmra.mxu3 %vm245_vm0, %v1079_v25  ;;  %v1321_v1 = vrot.slane %v1320_v54, 2  ;;  %v1547_v10 = vpack.c.b16 %v1546_v3, %v1546_v3  ;;  %v1368_v25 = vld [vmem:[%s2962_s29] sm:$0x3] }
  0x52   : >> { %1353 = vmatpush.bf16.msra.mxu3 %v2471_v4  ;;  %2109 = vmatmul.msk.bf16.vlgmr.msrb.gmra.mxu1 %vm245_vm0, %v977_v26  ;;  %v1204_v4 = vrot.slane %v1203_v56, 1 }
  0x53   : >> { %1236 = vmatpush.bf16.msra.mxu1 %v2463_v5  ;;  %v2491_v5 = vld [vmem:[%s3031_s1 + $0x318] sm:$0xff] }
  0x54   : >> { %1182 = vmatpush.bf16.msra.mxu0 %v2458_v8  ;;  %v2484_v8 = vld [vmem:[%s3031_s1 + $0x2e0] sm:$0xff] }
  0x55   : >> { %1299 = vmatpush.bf16.msra.mxu2 %v2466_v11  ;;  %v1431_v11 = vpack.c.b16 %v1430_v6, %v1430_v6 }
  0x56   : >> { %1354 = vmatpush.bf16.msra.mxu3 %v2470_v14  ;;  %v1549_v14 = vshrl.u32 %v1547_v10, 16 }
  0x57   : >> { %1237 = vmatpush.bf16.msra.mxu1 %v2462_v15  ;;  %v1552_v15 = vshll.u32 %v1547_v10, 16  ;;  %v1435_v16 = vshll.u32 %v1431_v11, 16  ;;  %v1433_v21 = vshrl.u32 %v1431_v11, 16 }
  0x58   : >> { %1183 = vmatpush.bf16.msra.mxu0 %v2457_v18  ;;  %v1492_v18 = vpack.c.b16 %v1491_v13, %v1491_v13  ;;  %v1551_v19 = vrot.slane %v1549_v14, 1 }
  0x59   : >> { %1300 = vmatpush.bf16.msra.mxu2 %v2465_v23  ;;  %v1554_v20 = vrot.slane %v1552_v15, 2  ;;  %v1437_v22 = vrot.slane %v1435_v16, 1  ;;  %v2488_v23 = vld [vmem:[%s3031_s1 + $0x300] sm:$0xff] }
  0x5a   : >> { %1355 = vmatpush.bf16.msra.mxu3 %v2469_v27 }
  0x5b   : >> { %1238 = vmatpush.bf16.msra.mxu1 %v2461_v24  ;;  %v1493_v24 = vrot.slane %v1492_v18, 1  ;;  %v1555_v26 = vor.u32 %v1554_v20, %v1551_v19  ;;  %v1438_v27 = vor.u32 %v1437_v22, %v1433_v21 }
  0x5c   : >> { %1184 = vmatpush.bf16.msra.mxu0 %v2456_v28  ;;  %v1597_v28 = vld [vmem:[%s2962_s29] sm:$0xc]  ;;  %s2387_s29 = sshll.u32 %s2554_s26, 1  ;;  %s3037_s26 = smov %s2634_s12 }
  0x5d   : >> { %1301 = vmatpush.bf16.msra.mxu2 %v2464_v31  ;;  %v1608_v29 = vunpack.c.l.b16 %v1597_v28  ;;  %s1655_s10 = scalar_lea.vmem %s2607_s25, %s2387_s29 }
  0x5e   : >> { %1356 = vmatpush.bf16.msra.mxu3 %v2468_v35 }
  0x5f   : >> { %1239 = vmatpush.bf16.msra.mxu1 %v2460_v33  ;;  %2185 = vmatmul.msk.bf16.vlgmr.msra.gmra.mxu0 %vm245_vm0, %v1149_v59  ;;  %v1609_v30 = vpack.c.b16 %v1608_v29, %v1608_v29 }
  0x60   : >> { %1409 = vmatpush.bf16.msrb.mxu0 %v2475_v32  ;;  %2235 = vmatmul.msk.bf16.vlgmr.msra.gmra.mxu2 %vm245_vm0, %v1266_v60 }
  0x61   : >> { %1525 = vmatpush.bf16.msrb.mxu2 %v2483_v34  ;;  %2260 = vmatmul.msk.bf16.vlgmr.msra.gmra.mxu3 %vm245_vm0, %v1321_v1  ;;  %v1610_v31 = vrot.slane %v1609_v30, 2 }
  0x62   : >> { %1587 = vmatpush.bf16.msrb.mxu3 %v2487_v42  ;;  %2210 = vmatmul.msk.bf16.vlgmr.msra.gmra.mxu1 %vm245_vm0, %v1204_v4  ;;  %v204_v42 = vperm.slane %v2597_v0, 0 }
  0x63   : >> { %1470 = vmatpush.bf16.msrb.mxu1 %v2479_v37 }
  0x64   : >> { %1410 = vmatpush.bf16.msrb.mxu0 %v2474_v43 }
  0x65   : >> { %1526 = vmatpush.bf16.msrb.mxu2 %v2482_v45 }
  0x66   : >> { %1588 = vmatpush.bf16.msrb.mxu3 %v2486_v52 }
  0x67   : >> { %1471 = vmatpush.bf16.msrb.mxu1 %v2478_v47 }
  0x68   : >> { %1411 = vmatpush.bf16.msrb.mxu0 %v2473_v53 }
  0x69   : >> { %1527 = vmatpush.bf16.msrb.mxu2 %v2481_v55 }
  0x6a   : >> { %1589 = vmatpush.bf16.msrb.mxu3 %v2485_v62 }
  0x6b   : >> { %1472 = vmatpush.bf16.msrb.mxu1 %v2477_v57 }
  0x6c   : >> { %1412 = vmatpush.bf16.msrb.mxu0 %v2472_v63 }
  0x6d   : >> { %1528 = vmatpush.bf16.msrb.mxu2 %v2480_v2 }
  0x6e   : >> { %1590 = vmatpush.bf16.msrb.mxu3 %v2484_v8 }
  0x6f   : >> { %1473 = vmatpush.bf16.msrb.mxu1 %v2476_v7  ;;  %2286 = vmatmul.msk.bf16.vlgmr.msrb.gmra.mxu0 %vm245_vm0, %v1368_v25 }
  0x70   : >> { %1642 = vmatpush.bf16.msra.mxu0 %v2491_v5  ;;  %2336 = vmatmul.msk.bf16.vlgmr.msrb.gmra.mxu2 %vm245_vm0, %v1493_v24 }
  0x71   : >> { %2361 = vmatmul.msk.bf16.vlgmr.msrb.gmra.mxu3 %vm245_vm0, %v1555_v26 }
  0x72   : >> { %2311 = vmatmul.msk.bf16.vlgmr.msrb.gmra.mxu1 %vm245_vm0, %v1438_v27 }
  0x74   : >> { %1643 = vmatpush.bf16.msra.mxu0 %v2490_v12 }
  0x78   : >> { %1644 = vmatpush.bf16.msra.mxu0 %v2489_v17 }
  0x7c   : >> { %1645 = vmatpush.bf16.msra.mxu0 %v2488_v23 }
  0x7f   : >> { %2386 = vmatmul.msk.bf16.vlgmr.msra.gmra.mxu0 %vm245_vm0, %v1610_v31 }
  0x9c   : >> { %v258_v32 = vpop.f32.mrf.mxu0 }
  0x9d   : >> { %v262_v46 = vadd.f32 %v258_v32, %v204_v42 }
  0x9f   : >> { %v319_v33 = vpop.f32.mrf.mxu1 }
  0xa0   : >> { %v323_v48 = vadd.f32 %v319_v33, %v262_v46 }
  0xa3   : >> { %v374_v34 = vpop.f32.mrf.mxu2 }
  0xa4   : >> { %v436_v35 = vpop.f32.mrf.mxu3  ;;  %v260_v36 = vpop.f32.mrf.mxu0  ;;  %v378_v50 = vadd.f32 %v374_v34, %v323_v48 }
  0xa6   : >> { %v440_v53 = vadd.f32 %v436_v35, %v378_v50 }
  0xa7   : >> { %v321_v37 = vpop.f32.mrf.mxu1 }
  0xab   : >> { %v376_v38 = vpop.f32.mrf.mxu2 }
  0xac   : >> { %v438_v39 = vpop.f32.mrf.mxu3  ;;  %v491_v40 = vpop.f32.mrf.mxu0 }
  0xad   : >> { %v495_v55 = vadd.f32 %v491_v40, %v440_v53 }
  0xaf   : >> { %v547_v41 = vpop.f32.mrf.mxu1 }
  0xb0   : >> { %v551_v59 = vadd.f32 %v547_v41, %v495_v55 }
  0xb3   : >> { %v608_v43 = vpop.f32.mrf.mxu2 }
  0xb4   : >> { %v663_v44 = vpop.f32.mrf.mxu3  ;;  %v493_v45 = vpop.f32.mrf.mxu0  ;;  %v612_v60 = vadd.f32 %v608_v43, %v551_v59 }
  0xb6   : >> { %v667_v63 = vadd.f32 %v663_v44, %v612_v60 }
  0xb7   : >> { %v549_v47 = vpop.f32.mrf.mxu1 }
  0xbb   : >> { %v610_v49 = vpop.f32.mrf.mxu2 }
  0xbc   : >> { %v665_v51 = vpop.f32.mrf.mxu3  ;;  %v725_v52 = vpop.f32.mrf.mxu0 }
  0xbd   : >> { %v729_v3 = vadd.f32 %v725_v52, %v667_v63 }
  0xbf   : >> { %v780_v54 = vpop.f32.mrf.mxu1 }
  0xc0   : >> { %v784_v5 = vadd.f32 %v780_v54, %v729_v3 }
  0xc3   : >> { %v836_v56 = vpop.f32.mrf.mxu2 }
  0xc4   : >> { %v897_v57 = vpop.f32.mrf.mxu3  ;;  %v727_v58 = vpop.f32.mrf.mxu0  ;;  %v840_v7 = vadd.f32 %v836_v56, %v784_v5 }
  0xc6   : >> { %v901_v10 = vadd.f32 %v897_v57, %v840_v7 }
  0xc7   : >> { %v782_v61 = vpop.f32.mrf.mxu1 }
  0xcb   : >> { %v838_v62 = vpop.f32.mrf.mxu2 }
  0xcc   : >> { %v899_v1 = vpop.f32.mrf.mxu3  ;;  %v952_v2 = vpop.f32.mrf.mxu0 }
  0xcd   : >> { %v956_v12 = vadd.f32 %v952_v2, %v901_v10 }
  0xcf   : >> { %v1014_v4 = vpop.f32.mrf.mxu1 }
  0xd0   : >> { %v1018_v16 = vadd.f32 %v1014_v4, %v956_v12 }
  0xd3   : >> { %v1069_v6 = vpop.f32.mrf.mxu2 }
  0xd4   : >> { %v1125_v8 = vpop.f32.mrf.mxu3  ;;  %v954_v9 = vpop.f32.mrf.mxu0  ;;  %v1073_v17 = vadd.f32 %v1069_v6, %v1018_v16 }
  0xd6   : >> { %v1129_v20 = vadd.f32 %v1125_v8, %v1073_v17 }
  0xd7   : >> { %v1016_v11 = vpop.f32.mrf.mxu1 }
  0xdb   : >> { %v1071_v13 = vpop.f32.mrf.mxu2 }
  0xdc   : >> { %v1127_v14 = vpop.f32.mrf.mxu3  ;;  %v1186_v15 = vpop.f32.mrf.mxu0 }
  0xdd   : >> { %v1190_v23 = vadd.f32 %v1186_v15, %v1129_v20 }
  0xdf   : >> { %v1241_v18 = vpop.f32.mrf.mxu1 }
  0xe0   : >> { %v1245_v25 = vadd.f32 %v1241_v18, %v1190_v23 }
  0xe3   : >> { %v1303_v19 = vpop.f32.mrf.mxu2 }
  0xe4   : >> { %v1358_v21 = vpop.f32.mrf.mxu3  ;;  %v1188_v22 = vpop.f32.mrf.mxu0  ;;  %v1307_v27 = vadd.f32 %v1303_v19, %v1245_v25 }
  0xe6   : >> { %v1362_v30 = vadd.f32 %v1358_v21, %v1307_v27 }
  0xe7   : >> { %v1243_v24 = vpop.f32.mrf.mxu1 }
  0xeb   : >> { %v1305_v26 = vpop.f32.mrf.mxu2 }
  0xec   : >> { %v1360_v28 = vpop.f32.mrf.mxu3  ;;  %v1414_v29 = vpop.f32.mrf.mxu0 }
  0xed   : >> { %v1418_v32 = vadd.f32 %v1414_v29, %v1362_v30 }
  0xef   : >> { %v1475_v31 = vpop.f32.mrf.mxu1 }
  0xf0   : >> { %v1479_v36 = vadd.f32 %v1475_v31, %v1418_v32 }
  0xf3   : >> { %v1530_v33 = vpop.f32.mrf.mxu2 }
  0xf4   : >> { %v1592_v34 = vpop.f32.mrf.mxu3  ;;  %v1416_v35 = vpop.f32.mrf.mxu0  ;;  %v1534_v37 = vadd.f32 %v1530_v33, %v1479_v36 }
  0xf6   : >> { %v1596_v40 = vadd.f32 %v1592_v34, %v1534_v37 }
  0xf7   : >> { %v1477_v38 = vpop.f32.mrf.mxu1 }
  0xfb   : >> { %v1532_v39 = vpop.f32.mrf.mxu2 }
  0xfc   : >> { %v1594_v41 = vpop.f32.mrf.mxu3  ;;  %v1647_v42 = vpop.f32.mrf.mxu0 }
  0xfd   : >> { %v1651_v43 = vadd.f32 %v1647_v42, %v1596_v40 }
  0xff   : >> { %v1652_v44 = vmax.f32 %v1651_v43, 0.0 }
 0x100   : > { %201 = sbr.rel (!%p199_p10) target bundleno = 15 (0xf), region = 99 }
 0x101   : >> { %v1653_v45 = vpack.c.bf16 %v1652_v44, %v1652_v44 }
 0x103   : >> { %1657 = vst.msk [vmem:[%s1655_s10] sm:$0x3] %vm1656_vm1, %v1653_v45 }
 0x104   : >> { %v1649_v46 = vpop.f32.mrf.mxu0 }
 0x105 PF: > { %s13_s14 = sadd.s32 1, %s2550_s14   ;;  %s3038_s12 = smov %s2546_s13 }
 0x106   : > { %p10_p11 = scmp.ge.s32.totalorder %s13_s14, 4   ;;  %s3039_s13 = smov %s3041_s15 }
 0x108   :  { %12 = sbr.rel (!%p10_p11) target bundleno = 2 (0x2), region = 110 }

</bundles_post_ra>
